<compile_context>
chip_gen: v7x
topology: tpu7x:2x2x1
jax: 0.10.0
libtpu: 0.0.40
codegen_flags: <defaults>
</compile_context>

<pallas_src>
import jax
import jax.numpy as jnp
import numpy as np
from jax import lax
from jax.experimental import pallas as pl
from jax.experimental.pallas import tpu as pltpu


def lm_entity_kernel(tok_ref,
                     emb_ref, w_lstm_ref, c_attn_ref, w1_ref, hem_ref, small_ref,
                     out_ref, tail_ref, state_ref,
                     x_sc, hseq_sc, c_sc):
    H = c_sc.shape[1]
    EH = x_sc.shape[1]
    E = EH - H
    M = hem_ref.shape[0]
    VP = w1_ref.shape[1]
    T = hseq_sc.shape[0]

    # ---- initialize carried recurrent state (single grid step) --------------
    x_sc[:, E:EH] = small_ref[5:6, 0:H]          # h0 into the shared [e | h] row
    c_sc[...] = small_ref[6:7, 0:H]

    # Hoist loop-invariant loads out of the recurrence.
    w_lstm = w_lstm_ref[...]                     # (E+H, 4H)
    b_lstm = small_ref[0:1, 0:4 * H]             # (1, 4H)

    # ---- serial part: ONLY the LSTM cell, fully unrolled ---------------------
    def lstm_step(t, carry):
        tok = tok_ref[t]
        # Embedding gather straight into lanes [0:E] of the persistent input row.
        x_sc[:, 0:E] = emb_ref[pl.ds(tok, 1), :]
        gates = (jnp.dot(x_sc[...], w_lstm,
                         preferred_element_type=jnp.float32) + b_lstm)   # (1, 4H)
        # PyTorch gate order (i, f, g, o); activations batched over the full 4H.
        sig = jax.nn.sigmoid(gates)
        th = jnp.tanh(gates)
        c_new = sig[:, 1 * H:2 * H] * c_sc[...] + sig[:, 0 * H:1 * H] * th[:, 2 * H:3 * H]
        h_new = sig[:, 3 * H:4 * H] * jnp.tanh(c_new)                    # (1, H)
        c_sc[...] = c_new
        x_sc[:, E:EH] = h_new                    # feeds the next step's matmul
        hseq_sc[pl.ds(t, 1), :] = h_new          # collect for the batched tail
        return carry

    lax.fori_loop(0, T, lstm_step, 0, unroll=True)

    # ---- batched (T, .) tail: logits, attention, softmax, d_i, z -------------
    hs = hseq_sc[...]                                                    # (T, H)

    # Vocabulary logits for all T steps in one MXU push: out = H_seq @ W1^T + b1.
    out_ref[...] = (jnp.dot(hs, w1_ref[...],
                            preferred_element_type=jnp.float32)
                    + small_ref[4:5, 0:VP])                              # (T, VP)

    # Attention over the (constant) entity memory; W_score folded host-side
    # into C = ws_w @ h_e_m.T.  The W_score bias cancels in the softmax.
    scores = jnp.dot(hs, c_attn_ref[...],
                     preferred_element_type=jnp.float32)                 # (T, M)
    scores = scores - jnp.max(scores, axis=-1, keepdims=True)
    ex = jnp.exp(scores)
    p_v = ex / jnp.sum(ex, axis=-1, keepdims=True)                       # (T, M)

    d_i = jnp.dot(p_v, hem_ref[...],
                  preferred_element_type=jnp.float32)                    # (T, H)
    z_lin = (jnp.sum(hs * small_ref[1:2, 0:H], axis=-1, keepdims=True)
             + jnp.sum(d_i * small_ref[2:3, 0:H], axis=-1, keepdims=True)
             + small_ref[3:4, 0:1])                                      # (T, 1)
    z_i = jax.nn.sigmoid(z_lin)

    # Lane-dense packed outputs, written once.
    tail_ref[...] = jnp.concatenate(
        [p_v, z_i,
         jnp.zeros((T, tail_ref.shape[1] - (M + 1)), jnp.float32)], axis=-1)
    state_ref[...] = jnp.concatenate(
        [hs[T - 1:T, :], c_sc[...],
         jnp.zeros((1, state_ref.shape[1] - 2 * H), jnp.float32)], axis=-1)


def _round_up(x, m):
    return ((x + m - 1) // m) * m


def lm_entity_forward(toks, params, state):
    """Run T sequential LMEntity.forward steps (else-branch) in one pallas_call."""
    (emb, w_ih, w_hh, b_ih, b_hh, ws_w, ws_b, wz_h, wz_d, bz, w1, b1) = params
    (h0, c0, h_e_m) = state
    V, E = emb.shape
    H = h0.shape[1]
    M = h_e_m.shape[0]
    T = int(toks.shape[0])
    del ws_b  # per-row constant -> cancels inside the softmax (scores not returned)

    # -------- one-time host-side weight preparation --------------------------
    # Fused LSTM matmul, K-major layout: gates = [e, h] @ W + b.
    w_lstm = jnp.concatenate([w_ih.T, w_hh.T], axis=0)             # (E+H, 4H)
    b_lstm = (b_ih + b_hh).reshape(-1)                             # (4H,)
    # W1 pre-transposed to (H, V), lane-padded to a multiple of 128.
    VP = _round_up(V, 128)
    w1_kn = jnp.zeros((H, VP), jnp.float32).at[:, :V].set(w1.T)
    b1_p = jnp.zeros((VP,), jnp.float32).at[:V].set(b1.reshape(-1))
    # Folded attention projection: scores = h @ (ws_w @ h_e_m.T)   (h_e_m constant).
    c_attn = ws_w @ h_e_m.T                                        # (H, M)

    # -------- coalesce all small params / init state into one (8, L) slab ----
    L = _round_up(max(4 * H, H, VP, 1), 128)
    small = jnp.zeros((8, L), jnp.float32)
    small = small.at[0, :4 * H].set(b_lstm)
    small = small.at[1, :H].set(wz_h.reshape(-1))
    small = small.at[2, :H].set(wz_d.reshape(-1))
    small = small.at[3, 0].set(bz.reshape(-1)[0])
    small = small.at[4, :VP].set(b1_p)
    small = small.at[5, :H].set(h0.reshape(-1))
    small = small.at[6, :H].set(c0.reshape(-1))

    PACK = _round_up(M + 1, 128)       # [p_v | z | pad]
    SW = _round_up(2 * H, 128)         # [h_final | c_final | pad]

    inputs = (emb, w_lstm, c_attn, w1_kn, h_e_m, small)

    out_p, tail_p, st_p = pl.pallas_call(
        lm_entity_kernel,
        out_shape=(
            jax.ShapeDtypeStruct((T, VP), jnp.float32),    # all-step logits
            jax.ShapeDtypeStruct((T, PACK), jnp.float32),  # all-step [p_v | z]
            jax.ShapeDtypeStruct((1, SW), jnp.float32),    # final [h | c]
        ),
        grid_spec=pltpu.PrefetchScalarGridSpec(
            num_scalar_prefetch=1,
            grid=(1,),
            # Full-array blocks, constant index_maps -> one DMA per operand,
            # everything VMEM-resident; outputs written back exactly once.
            in_specs=[pl.BlockSpec(a.shape, lambda i, tok: (0, 0)) for a in inputs],
            out_specs=[
                pl.BlockSpec((T, VP), lambda i, tok: (0, 0)),
                pl.BlockSpec((T, PACK), lambda i, tok: (0, 0)),
                pl.BlockSpec((1, SW), lambda i, tok: (0, 0)),
            ],
            scratch_shapes=[
                pltpu.VMEM((1, E + H), jnp.float32),   # persistent [e | h] input row
                pltpu.VMEM((T, H), jnp.float32),       # all hidden states for the tail
                pltpu.VMEM((1, H), jnp.float32),       # carried cell state
            ],
        ),
        compiler_params=pltpu.CompilerParams(
            dimension_semantics=("arbitrary",)),
    )(toks, *inputs)

    out = out_p[:, :V]                                             # (T, V)
    p_v = tail_p[:, :M]                                            # (T, M)
    z_i = tail_p[:, M:M + 1]                                       # (T, 1)
    h_last = st_p[:, :H]                                           # (1, H)
    c_last = st_p[:, H:2 * H]                                      # (1, H)
    # PyTorch keeps only the final hidden state in self.hidden.
    return out, z_i, p_v, (h_last, c_last)


def ref_forward(toks, params, state):
    """Pure-JAX reference mirroring T sequential PyTorch forward calls (else branch)."""
    (emb, w_ih, w_hh, b_ih, b_hh, ws_w, ws_b, wz_h, wz_d, bz, w1, b1) = params
    (h, c, h_e_m) = state
    H = h.shape[1]
    outs, zs, pvs = [], [], []
    for t in range(int(toks.shape[0])):
        e = emb[toks[t]][None, :]
        gates = e @ w_ih.T + h @ w_hh.T + b_ih + b_hh
        i_g = jax.nn.sigmoid(gates[:, 0 * H:1 * H])
        f_g = jax.nn.sigmoid(gates[:, 1 * H:2 * H])
        g_g = jnp.tanh(gates[:, 2 * H:3 * H])
        o_g = jax.nn.sigmoid(gates[:, 3 * H:4 * H])
        c = f_g * c + i_g * g_g
        h = o_g * jnp.tanh(c)
        ws_hem = h_e_m @ ws_w.T + ws_b
        scores = (h @ ws_hem.T).reshape(-1)
        p_v = jax.nn.softmax(scores)
        d_i = p_v[None, :] @ h_e_m
        z = jax.nn.sigmoid(jnp.sum(h * wz_h, -1, keepdims=True)
                           + jnp.sum(d_i * wz_d, -1, keepdims=True) + bz)
        out = h @ w1.T + b1
        outs.append(out)
        zs.append(z)
        pvs.append(p_v[None, :])
    return (jnp.concatenate(outs, 0), jnp.concatenate(zs, 0),
            jnp.concatenate(pvs, 0), (h, c))


if __name__ == "__main__":
    H, E, V, M, T = 32, 32, 128, 8, 8   # hidden, embedding, vocab, #entities, #steps

    key = jax.random.PRNGKey(0)
    ks = jax.random.split(key, 10)
    u = lambda k, shape, lo, hi: jax.random.uniform(k, shape, jnp.float32, lo, hi)
    s = 1.0 / (H ** 0.5)

    # nn.Embedding / W_score / z_weights / W1 weights: uniform(-0.1, 0.1); biases zero.
    emb = u(ks[0], (V, E), -0.1, 0.1)
    # nn.LSTM default init: uniform(-1/sqrt(H), 1/sqrt(H)), gate order (i, f, g, o).
    w_ih = u(ks[1], (4 * H, E), -s, s)
    w_hh = u(ks[2], (4 * H, H), -s, s)
    b_ih = u(ks[3], (1, 4 * H), -s, s)
    b_hh = u(ks[4], (1, 4 * H), -s, s)
    ws_w = u(ks[5], (H, H), -0.1, 0.1)
    ws_b = jnp.zeros((1, H), jnp.float32)
    wz = u(ks[6], (1, 2 * H), -0.1, 0.1)
    wz_h, wz_d = wz[:, :H], wz[:, H:]
    bz = jnp.zeros((1, 1), jnp.float32)
    w1 = u(ks[7], (V, H), -0.1, 0.1)
    b1 = jnp.zeros((1, V), jnp.float32)

    params = (emb, w_ih, w_hh, b_ih, b_hh, ws_w, ws_b, wz_h, wz_d, bz, w1, b1)

    # Module state: hidden = zeros (reset_state, train_states=False); h_e_m is the
    # entity memory (row 0 = h_e_0, remaining rows emulate previously stored entities).
    h0 = jnp.zeros((1, H), jnp.float32)
    c0 = jnp.zeros((1, H), jnp.float32)
    h_e_0 = u(ks[8], (1, H), -0.1, 0.1)
    h_e_m = jnp.concatenate([h_e_0, u(ks[9], (M - 1, H), -0.1, 0.1)], axis=0)
    state = (h0, c0, h_e_m)

    toks = jnp.array([5, 17, 3, 99, 0, 42, 7, 120], dtype=jnp.int32)  # T tokens

    out, z_i, p_v, (h_new, c_new) = lm_entity_forward(toks, params, state)
    jax.block_until_ready((out, z_i, p_v, h_new, c_new))

    # Validate against the pure-JAX reference (tolerances allow for the fused
    # LSTM matmul and the host-folded attention projection rounding order).
    r_out, r_z, r_pv, (r_h, r_c) = ref_forward(toks, params, state)
    np.testing.assert_allclose(np.asarray(out), np.asarray(r_out), rtol=1e-4, atol=1e-4)
    np.testing.assert_allclose(np.asarray(z_i), np.asarray(r_z), rtol=1e-4, atol=1e-4)
    np.testing.assert_allclose(np.asarray(p_v), np.asarray(r_pv), rtol=1e-4, atol=1e-4)
    np.testing.assert_allclose(np.asarray(h_new), np.asarray(r_h), rtol=1e-4, atol=1e-4)
    np.testing.assert_allclose(np.asarray(c_new), np.asarray(r_c), rtol=1e-4, atol=1e-4)

    print("KERNEL_OK")
</pallas_src>

<mosaic_0001>
module attributes {stable_mosaic.version = 11 : i64} {
  func.func @lm_entity_kernel(%arg0: i32, %arg1: memref<8xi32, #tpu.memory_space<smem>>, %arg2: memref<128x32xf32, #tpu.memory_space<vmem>>, %arg3: memref<64x128xf32, #tpu.memory_space<vmem>>, %arg4: memref<32x8xf32, #tpu.memory_space<vmem>>, %arg5: memref<32x128xf32, #tpu.memory_space<vmem>>, %arg6: memref<8x32xf32, #tpu.memory_space<vmem>>, %arg7: memref<8x128xf32, #tpu.memory_space<vmem>>, %arg8: memref<8x128xf32, #tpu.memory_space<vmem>>, %arg9: memref<8x128xf32, #tpu.memory_space<vmem>>, %arg10: memref<1x128xf32, #tpu.memory_space<vmem>>, %arg11: memref<1x64xf32, #tpu.memory_space<vmem>>, %arg12: memref<8x32xf32, #tpu.memory_space<vmem>>, %arg13: memref<1x32xf32, #tpu.memory_space<vmem>>) attributes {dimension_semantics = [#tpu.dimension_semantics<arbitrary>], iteration_bounds = array<i64: 1>, scalar_prefetch = 1 : i64, scratch_operands = 3 : i64, tpu.core_type = #tpu.core_type<tc>, window_params = [{pipeline_mode = #tpu.pipeline_mode<synchronous>, transform_indices = @transform_0, window_bounds = array<i64: 128, 32>}, {pipeline_mode = #tpu.pipeline_mode<synchronous>, transform_indices = @transform_1, window_bounds = array<i64: 64, 128>}, {pipeline_mode = #tpu.pipeline_mode<synchronous>, transform_indices = @transform_2, window_bounds = array<i64: 32, 8>}, {pipeline_mode = #tpu.pipeline_mode<synchronous>, transform_indices = @transform_3, window_bounds = array<i64: 32, 128>}, {pipeline_mode = #tpu.pipeline_mode<synchronous>, transform_indices = @transform_4, window_bounds = array<i64: 8, 32>}, {pipeline_mode = #tpu.pipeline_mode<synchronous>, transform_indices = @transform_5, window_bounds = array<i64: 8, 128>}, {pipeline_mode = #tpu.pipeline_mode<synchronous>, transform_indices = @transform_6, window_bounds = array<i64: 8, 128>}, {pipeline_mode = #tpu.pipeline_mode<synchronous>, transform_indices = @transform_7, window_bounds = array<i64: 8, 128>}, {pipeline_mode = #tpu.pipeline_mode<synchronous>, transform_indices = @transform_8, window_bounds = array<i64: 1, 128>}]} {
    %c5 = arith.constant 5 : index
    %c0 = arith.constant 0 : index
    %0 = vector.load %arg7[%c5, %c0] : memref<8x128xf32, #tpu.memory_space<vmem>>, vector<1x32xf32>
    %c0_0 = arith.constant 0 : index
    %c32 = arith.constant 32 : index
    %1 = vector.load %arg11[%c0_0, %c32] : memref<1x64xf32, #tpu.memory_space<vmem>>, vector<1x32xf32>
    tpu.vector_store %arg11[%c0_0, %c32], %0 {strides = array<i32>} : memref<1x64xf32, #tpu.memory_space<vmem>>, vector<1x32xf32>,
    %c6 = arith.constant 6 : index
    %c0_1 = arith.constant 0 : index
    %2 = vector.load %arg7[%c6, %c0_1] : memref<8x128xf32, #tpu.memory_space<vmem>>, vector<1x32xf32>
    %c0_2 = arith.constant 0 : index
    %c0_3 = arith.constant 0 : index
    %3 = vector.load %arg13[%c0_2, %c0_3] : memref<1x32xf32, #tpu.memory_space<vmem>>, vector<1x32xf32>
    tpu.vector_store %arg13[%c0_2, %c0_3], %2 {strides = array<i32>} : memref<1x32xf32, #tpu.memory_space<vmem>>, vector<1x32xf32>,
    %c0_4 = arith.constant 0 : index
    %c0_5 = arith.constant 0 : index
    %4 = vector.load %arg3[%c0_4, %c0_5] : memref<64x128xf32, #tpu.memory_space<vmem>>, vector<64x128xf32>
    %c0_6 = arith.constant 0 : index
    %c0_7 = arith.constant 0 : index
    %5 = vector.load %arg7[%c0_6, %c0_7] : memref<8x128xf32, #tpu.memory_space<vmem>>, vector<1x128xf32>
    %c0_i32 = arith.constant 0 : i32
    %6 = arith.index_cast %c0_i32 : i32 to index
    %7 = memref.load %arg1[%6] : memref<8xi32, #tpu.memory_space<smem>>
    %8 = arith.index_cast %7 : i32 to index
    %c0_8 = arith.constant 0 : index
    %9 = vector.load %arg2[%8, %c0_8] : memref<128x32xf32, #tpu.memory_space<vmem>>, vector<1x32xf32>
    %c0_9 = arith.constant 0 : index
    %c0_10 = arith.constant 0 : index
    %10 = vector.load %arg11[%c0_9, %c0_10] : memref<1x64xf32, #tpu.memory_space<vmem>>, vector<1x32xf32>
    tpu.vector_store %arg11[%c0_9, %c0_10], %9 {strides = array<i32>} : memref<1x64xf32, #tpu.memory_space<vmem>>, vector<1x32xf32>,
    %c0_11 = arith.constant 0 : index
    %c0_12 = arith.constant 0 : index
    %11 = vector.load %arg11[%c0_11, %c0_12] : memref<1x64xf32, #tpu.memory_space<vmem>>, vector<1x64xf32>
    %cst = arith.constant dense<0.000000e+00> : vector<1x128xf32>
    %12 = tpu.matmul %11, %4, %cst {dimension_numbers = #tpu.dot_dimension_numbers<[1], [0], [0], [1], [0, 0, 1, 1], [], []>} : vector<1x64xf32>, vector<64x128xf32>, vector<1x128xf32> -> vector<1x128xf32>
    %13 = arith.addf %12, %5 : vector<1x128xf32>
    %14 = arith.negf %13 : vector<1x128xf32>
    %15 = math.exp %14 : vector<1x128xf32>
    %cst_13 = arith.constant 1.000000e+00 : f32
    %16 = vector.broadcast %cst_13 : f32 to vector<1x128xf32>
    %17 = arith.addf %16, %15 : vector<1x128xf32>
    %18 = arith.divf %16, %17 : vector<1x128xf32>
    %19 = math.tanh %13 : vector<1x128xf32>
    %20 = vector.extract_strided_slice %18 {offsets = [0, 32], sizes = [1, 32], strides = [1, 1]} : vector<1x128xf32> to vector<1x32xf32>
    %c0_14 = arith.constant 0 : index
    %c0_15 = arith.constant 0 : index
    %21 = vector.load %arg13[%c0_14, %c0_15] : memref<1x32xf32, #tpu.memory_space<vmem>>, vector<1x32xf32>
    %22 = arith.mulf %20, %21 : vector<1x32xf32>
    %23 = vector.extract_strided_slice %18 {offsets = [0, 0], sizes = [1, 32], strides = [1, 1]} : vector<1x128xf32> to vector<1x32xf32>
    %24 = vector.extract_strided_slice %19 {offsets = [0, 64], sizes = [1, 32], strides = [1, 1]} : vector<1x128xf32> to vector<1x32xf32>
    %25 = arith.mulf %23, %24 : vector<1x32xf32>
    %26 = arith.addf %22, %25 : vector<1x32xf32>
    %27 = vector.extract_strided_slice %18 {offsets = [0, 96], sizes = [1, 32], strides = [1, 1]} : vector<1x128xf32> to vector<1x32xf32>
    %28 = math.tanh %26 : vector<1x32xf32>
    %29 = arith.mulf %27, %28 : vector<1x32xf32>
    %c0_16 = arith.constant 0 : index
    %c0_17 = arith.constant 0 : index
    %30 = vector.load %arg13[%c0_16, %c0_17] : memref<1x32xf32, #tpu.memory_space<vmem>>, vector<1x32xf32>
    tpu.vector_store %arg13[%c0_16, %c0_17], %26 {strides = array<i32>} : memref<1x32xf32, #tpu.memory_space<vmem>>, vector<1x32xf32>,
    %c0_18 = arith.constant 0 : index
    %c32_19 = arith.constant 32 : index
    %31 = vector.load %arg11[%c0_18, %c32_19] : memref<1x64xf32, #tpu.memory_space<vmem>>, vector<1x32xf32>
    tpu.vector_store %arg11[%c0_18, %c32_19], %29 {strides = array<i32>} : memref<1x64xf32, #tpu.memory_space<vmem>>, vector<1x32xf32>,
    %32 = arith.index_cast %c0_i32 : i32 to index
    %c0_20 = arith.constant 0 : index
    %33 = vector.load %arg12[%32, %c0_20] : memref<8x32xf32, #tpu.memory_space<vmem>>, vector<1x32xf32>
    tpu.vector_store %arg12[%32, %c0_20], %29 {strides = array<i32>} : memref<8x32xf32, #tpu.memory_space<vmem>>, vector<1x32xf32>,
    %c1_i32 = arith.constant 1 : i32
    %34 = arith.index_cast %c1_i32 : i32 to index
    %35 = memref.load %arg1[%34] : memref<8xi32, #tpu.memory_space<smem>>
    %36 = arith.index_cast %35 : i32 to index
    %c0_21 = arith.constant 0 : index
    %37 = vector.load %arg2[%36, %c0_21] : memref<128x32xf32, #tpu.memory_space<vmem>>, vector<1x32xf32>
    %c0_22 = arith.constant 0 : index
    %c0_23 = arith.constant 0 : index
    %38 = vector.load %arg11[%c0_22, %c0_23] : memref<1x64xf32, #tpu.memory_space<vmem>>, vector<1x32xf32>
    tpu.vector_store %arg11[%c0_22, %c0_23], %37 {strides = array<i32>} : memref<1x64xf32, #tpu.memory_space<vmem>>, vector<1x32xf32>,
    %c0_24 = arith.constant 0 : index
    %c0_25 = arith.constant 0 : index
    %39 = vector.load %arg11[%c0_24, %c0_25] : memref<1x64xf32, #tpu.memory_space<vmem>>, vector<1x64xf32>
    %cst_26 = arith.constant dense<0.000000e+00> : vector<1x128xf32>
    %40 = tpu.matmul %39, %4, %cst_26 {dimension_numbers = #tpu.dot_dimension_numbers<[1], [0], [0], [1], [0, 0, 1, 1], [], []>} : vector<1x64xf32>, vector<64x128xf32>, vector<1x128xf32> -> vector<1x128xf32>
    %41 = arith.addf %40, %5 : vector<1x128xf32>
    %42 = arith.negf %41 : vector<1x128xf32>
    %43 = math.exp %42 : vector<1x128xf32>
    %cst_27 = arith.constant 1.000000e+00 : f32
    %44 = vector.broadcast %cst_27 : f32 to vector<1x128xf32>
    %45 = arith.addf %44, %43 : vector<1x128xf32>
    %46 = arith.divf %44, %45 : vector<1x128xf32>
    %47 = math.tanh %41 : vector<1x128xf32>
    %48 = vector.extract_strided_slice %46 {offsets = [0, 32], sizes = [1, 32], strides = [1, 1]} : vector<1x128xf32> to vector<1x32xf32>
    %c0_28 = arith.constant 0 : index
    %c0_29 = arith.constant 0 : index
    %49 = vector.load %arg13[%c0_28, %c0_29] : memref<1x32xf32, #tpu.memory_space<vmem>>, vector<1x32xf32>
    %50 = arith.mulf %48, %49 : vector<1x32xf32>
    %51 = vector.extract_strided_slice %46 {offsets = [0, 0], sizes = [1, 32], strides = [1, 1]} : vector<1x128xf32> to vector<1x32xf32>
    %52 = vector.extract_strided_slice %47 {offsets = [0, 64], sizes = [1, 32], strides = [1, 1]} : vector<1x128xf32> to vector<1x32xf32>
    %53 = arith.mulf %51, %52 : vector<1x32xf32>
    %54 = arith.addf %50, %53 : vector<1x32xf32>
    %55 = vector.extract_strided_slice %46 {offsets = [0, 96], sizes = [1, 32], strides = [1, 1]} : vector<1x128xf32> to vector<1x32xf32>
    %56 = math.tanh %54 : vector<1x32xf32>
    %57 = arith.mulf %55, %56 : vector<1x32xf32>
    %c0_30 = arith.constant 0 : index
    %c0_31 = arith.constant 0 : index
    %58 = vector.load %arg13[%c0_30, %c0_31] : memref<1x32xf32, #tpu.memory_space<vmem>>, vector<1x32xf32>
    tpu.vector_store %arg13[%c0_30, %c0_31], %54 {strides = array<i32>} : memref<1x32xf32, #tpu.memory_space<vmem>>, vector<1x32xf32>,
    %c0_32 = arith.constant 0 : index
    %c32_33 = arith.constant 32 : index
    %59 = vector.load %arg11[%c0_32, %c32_33] : memref<1x64xf32, #tpu.memory_space<vmem>>, vector<1x32xf32>
    tpu.vector_store %arg11[%c0_32, %c32_33], %57 {strides = array<i32>} : memref<1x64xf32, #tpu.memory_space<vmem>>, vector<1x32xf32>,
    %60 = arith.index_cast %c1_i32 : i32 to index
    %c0_34 = arith.constant 0 : index
    %61 = vector.load %arg12[%60, %c0_34] : memref<8x32xf32, #tpu.memory_space<vmem>>, vector<1x32xf32>
    tpu.vector_store %arg12[%60, %c0_34], %57 {strides = array<i32>} : memref<8x32xf32, #tpu.memory_space<vmem>>, vector<1x32xf32>,
    %c2_i32 = arith.constant 2 : i32
    %62 = arith.index_cast %c2_i32 : i32 to index
    %63 = memref.load %arg1[%62] : memref<8xi32, #tpu.memory_space<smem>>
    %64 = arith.index_cast %63 : i32 to index
    %c0_35 = arith.constant 0 : index
    %65 = vector.load %arg2[%64, %c0_35] : memref<128x32xf32, #tpu.memory_space<vmem>>, vector<1x32xf32>
    %c0_36 = arith.constant 0 : index
    %c0_37 = arith.constant 0 : index
    %66 = vector.load %arg11[%c0_36, %c0_37] : memref<1x64xf32, #tpu.memory_space<vmem>>, vector<1x32xf32>
    tpu.vector_store %arg11[%c0_36, %c0_37], %65 {strides = array<i32>} : memref<1x64xf32, #tpu.memory_space<vmem>>, vector<1x32xf32>,
    %c0_38 = arith.constant 0 : index
    %c0_39 = arith.constant 0 : index
    %67 = vector.load %arg11[%c0_38, %c0_39] : memref<1x64xf32, #tpu.memory_space<vmem>>, vector<1x64xf32>
    %cst_40 = arith.constant dense<0.000000e+00> : vector<1x128xf32>
    %68 = tpu.matmul %67, %4, %cst_40 {dimension_numbers = #tpu.dot_dimension_numbers<[1], [0], [0], [1], [0, 0, 1, 1], [], []>} : vector<1x64xf32>, vector<64x128xf32>, vector<1x128xf32> -> vector<1x128xf32>
    %69 = arith.addf %68, %5 : vector<1x128xf32>
    %70 = arith.negf %69 : vector<1x128xf32>
    %71 = math.exp %70 : vector<1x128xf32>
    %cst_41 = arith.constant 1.000000e+00 : f32
    %72 = vector.broadcast %cst_41 : f32 to vector<1x128xf32>
    %73 = arith.addf %72, %71 : vector<1x128xf32>
    %74 = arith.divf %72, %73 : vector<1x128xf32>
    %75 = math.tanh %69 : vector<1x128xf32>
    %76 = vector.extract_strided_slice %74 {offsets = [0, 32], sizes = [1, 32], strides = [1, 1]} : vector<1x128xf32> to vector<1x32xf32>
    %c0_42 = arith.constant 0 : index
    %c0_43 = arith.constant 0 : index
    %77 = vector.load %arg13[%c0_42, %c0_43] : memref<1x32xf32, #tpu.memory_space<vmem>>, vector<1x32xf32>
    %78 = arith.mulf %76, %77 : vector<1x32xf32>
    %79 = vector.extract_strided_slice %74 {offsets = [0, 0], sizes = [1, 32], strides = [1, 1]} : vector<1x128xf32> to vector<1x32xf32>
    %80 = vector.extract_strided_slice %75 {offsets = [0, 64], sizes = [1, 32], strides = [1, 1]} : vector<1x128xf32> to vector<1x32xf32>
    %81 = arith.mulf %79, %80 : vector<1x32xf32>
    %82 = arith.addf %78, %81 : vector<1x32xf32>
    %83 = vector.extract_strided_slice %74 {offsets = [0, 96], sizes = [1, 32], strides = [1, 1]} : vector<1x128xf32> to vector<1x32xf32>
    %84 = math.tanh %82 : vector<1x32xf32>
    %85 = arith.mulf %83, %84 : vector<1x32xf32>
    %c0_44 = arith.constant 0 : index
    %c0_45 = arith.constant 0 : index
    %86 = vector.load %arg13[%c0_44, %c0_45] : memref<1x32xf32, #tpu.memory_space<vmem>>, vector<1x32xf32>
    tpu.vector_store %arg13[%c0_44, %c0_45], %82 {strides = array<i32>} : memref<1x32xf32, #tpu.memory_space<vmem>>, vector<1x32xf32>,
    %c0_46 = arith.constant 0 : index
    %c32_47 = arith.constant 32 : index
    %87 = vector.load %arg11[%c0_46, %c32_47] : memref<1x64xf32, #tpu.memory_space<vmem>>, vector<1x32xf32>
    tpu.vector_store %arg11[%c0_46, %c32_47], %85 {strides = array<i32>} : memref<1x64xf32, #tpu.memory_space<vmem>>, vector<1x32xf32>,
    %88 = arith.index_cast %c2_i32 : i32 to index
    %c0_48 = arith.constant 0 : index
    %89 = vector.load %arg12[%88, %c0_48] : memref<8x32xf32, #tpu.memory_space<vmem>>, vector<1x32xf32>
    tpu.vector_store %arg12[%88, %c0_48], %85 {strides = array<i32>} : memref<8x32xf32, #tpu.memory_space<vmem>>, vector<1x32xf32>,
    %c3_i32 = arith.constant 3 : i32
    %90 = arith.index_cast %c3_i32 : i32 to index
    %91 = memref.load %arg1[%90] : memref<8xi32, #tpu.memory_space<smem>>
    %92 = arith.index_cast %91 : i32 to index
    %c0_49 = arith.constant 0 : index
    %93 = vector.load %arg2[%92, %c0_49] : memref<128x32xf32, #tpu.memory_space<vmem>>, vector<1x32xf32>
    %c0_50 = arith.constant 0 : index
    %c0_51 = arith.constant 0 : index
    %94 = vector.load %arg11[%c0_50, %c0_51] : memref<1x64xf32, #tpu.memory_space<vmem>>, vector<1x32xf32>
    tpu.vector_store %arg11[%c0_50, %c0_51], %93 {strides = array<i32>} : memref<1x64xf32, #tpu.memory_space<vmem>>, vector<1x32xf32>,
    %c0_52 = arith.constant 0 : index
    %c0_53 = arith.constant 0 : index
    %95 = vector.load %arg11[%c0_52, %c0_53] : memref<1x64xf32, #tpu.memory_space<vmem>>, vector<1x64xf32>
    %cst_54 = arith.constant dense<0.000000e+00> : vector<1x128xf32>
    %96 = tpu.matmul %95, %4, %cst_54 {dimension_numbers = #tpu.dot_dimension_numbers<[1], [0], [0], [1], [0, 0, 1, 1], [], []>} : vector<1x64xf32>, vector<64x128xf32>, vector<1x128xf32> -> vector<1x128xf32>
    %97 = arith.addf %96, %5 : vector<1x128xf32>
    %98 = arith.negf %97 : vector<1x128xf32>
    %99 = math.exp %98 : vector<1x128xf32>
    %cst_55 = arith.constant 1.000000e+00 : f32
    %100 = vector.broadcast %cst_55 : f32 to vector<1x128xf32>
    %101 = arith.addf %100, %99 : vector<1x128xf32>
    %102 = arith.divf %100, %101 : vector<1x128xf32>
    %103 = math.tanh %97 : vector<1x128xf32>
    %104 = vector.extract_strided_slice %102 {offsets = [0, 32], sizes = [1, 32], strides = [1, 1]} : vector<1x128xf32> to vector<1x32xf32>
    %c0_56 = arith.constant 0 : index
    %c0_57 = arith.constant 0 : index
    %105 = vector.load %arg13[%c0_56, %c0_57] : memref<1x32xf32, #tpu.memory_space<vmem>>, vector<1x32xf32>
    %106 = arith.mulf %104, %105 : vector<1x32xf32>
    %107 = vector.extract_strided_slice %102 {offsets = [0, 0], sizes = [1, 32], strides = [1, 1]} : vector<1x128xf32> to vector<1x32xf32>
    %108 = vector.extract_strided_slice %103 {offsets = [0, 64], sizes = [1, 32], strides = [1, 1]} : vector<1x128xf32> to vector<1x32xf32>
    %109 = arith.mulf %107, %108 : vector<1x32xf32>
    %110 = arith.addf %106, %109 : vector<1x32xf32>
    %111 = vector.extract_strided_slice %102 {offsets = [0, 96], sizes = [1, 32], strides = [1, 1]} : vector<1x128xf32> to vector<1x32xf32>
    %112 = math.tanh %110 : vector<1x32xf32>
    %113 = arith.mulf %111, %112 : vector<1x32xf32>
    %c0_58 = arith.constant 0 : index
    %c0_59 = arith.constant 0 : index
    %114 = vector.load %arg13[%c0_58, %c0_59] : memref<1x32xf32, #tpu.memory_space<vmem>>, vector<1x32xf32>
    tpu.vector_store %arg13[%c0_58, %c0_59], %110 {strides = array<i32>} : memref<1x32xf32, #tpu.memory_space<vmem>>, vector<1x32xf32>,
    %c0_60 = arith.constant 0 : index
    %c32_61 = arith.constant 32 : index
    %115 = vector.load %arg11[%c0_60, %c32_61] : memref<1x64xf32, #tpu.memory_space<vmem>>, vector<1x32xf32>
    tpu.vector_store %arg11[%c0_60, %c32_61], %113 {strides = array<i32>} : memref<1x64xf32, #tpu.memory_space<vmem>>, vector<1x32xf32>,
    %116 = arith.index_cast %c3_i32 : i32 to index
    %c0_62 = arith.constant 0 : index
    %117 = vector.load %arg12[%116, %c0_62] : memref<8x32xf32, #tpu.memory_space<vmem>>, vector<1x32xf32>
    tpu.vector_store %arg12[%116, %c0_62], %113 {strides = array<i32>} : memref<8x32xf32, #tpu.memory_space<vmem>>, vector<1x32xf32>,
    %c4_i32 = arith.constant 4 : i32
    %118 = arith.index_cast %c4_i32 : i32 to index
    %119 = memref.load %arg1[%118] : memref<8xi32, #tpu.memory_space<smem>>
    %120 = arith.index_cast %119 : i32 to index
    %c0_63 = arith.constant 0 : index
    %121 = vector.load %arg2[%120, %c0_63] : memref<128x32xf32, #tpu.memory_space<vmem>>, vector<1x32xf32>
    %c0_64 = arith.constant 0 : index
    %c0_65 = arith.constant 0 : index
    %122 = vector.load %arg11[%c0_64, %c0_65] : memref<1x64xf32, #tpu.memory_space<vmem>>, vector<1x32xf32>
    tpu.vector_store %arg11[%c0_64, %c0_65], %121 {strides = array<i32>} : memref<1x64xf32, #tpu.memory_space<vmem>>, vector<1x32xf32>,
    %c0_66 = arith.constant 0 : index
    %c0_67 = arith.constant 0 : index
    %123 = vector.load %arg11[%c0_66, %c0_67] : memref<1x64xf32, #tpu.memory_space<vmem>>, vector<1x64xf32>
    %cst_68 = arith.constant dense<0.000000e+00> : vector<1x128xf32>
    %124 = tpu.matmul %123, %4, %cst_68 {dimension_numbers = #tpu.dot_dimension_numbers<[1], [0], [0], [1], [0, 0, 1, 1], [], []>} : vector<1x64xf32>, vector<64x128xf32>, vector<1x128xf32> -> vector<1x128xf32>
    %125 = arith.addf %124, %5 : vector<1x128xf32>
    %126 = arith.negf %125 : vector<1x128xf32>
    %127 = math.exp %126 : vector<1x128xf32>
    %cst_69 = arith.constant 1.000000e+00 : f32
    %128 = vector.broadcast %cst_69 : f32 to vector<1x128xf32>
    %129 = arith.addf %128, %127 : vector<1x128xf32>
    %130 = arith.divf %128, %129 : vector<1x128xf32>
    %131 = math.tanh %125 : vector<1x128xf32>
    %132 = vector.extract_strided_slice %130 {offsets = [0, 32], sizes = [1, 32], strides = [1, 1]} : vector<1x128xf32> to vector<1x32xf32>
    %c0_70 = arith.constant 0 : index
    %c0_71 = arith.constant 0 : index
    %133 = vector.load %arg13[%c0_70, %c0_71] : memref<1x32xf32, #tpu.memory_space<vmem>>, vector<1x32xf32>
    %134 = arith.mulf %132, %133 : vector<1x32xf32>
    %135 = vector.extract_strided_slice %130 {offsets = [0, 0], sizes = [1, 32], strides = [1, 1]} : vector<1x128xf32> to vector<1x32xf32>
    %136 = vector.extract_strided_slice %131 {offsets = [0, 64], sizes = [1, 32], strides = [1, 1]} : vector<1x128xf32> to vector<1x32xf32>
    %137 = arith.mulf %135, %136 : vector<1x32xf32>
    %138 = arith.addf %134, %137 : vector<1x32xf32>
    %139 = vector.extract_strided_slice %130 {offsets = [0, 96], sizes = [1, 32], strides = [1, 1]} : vector<1x128xf32> to vector<1x32xf32>
    %140 = math.tanh %138 : vector<1x32xf32>
    %141 = arith.mulf %139, %140 : vector<1x32xf32>
    %c0_72 = arith.constant 0 : index
    %c0_73 = arith.constant 0 : index
    %142 = vector.load %arg13[%c0_72, %c0_73] : memref<1x32xf32, #tpu.memory_space<vmem>>, vector<1x32xf32>
    tpu.vector_store %arg13[%c0_72, %c0_73], %138 {strides = array<i32>} : memref<1x32xf32, #tpu.memory_space<vmem>>, vector<1x32xf32>,
    %c0_74 = arith.constant 0 : index
    %c32_75 = arith.constant 32 : index
    %143 = vector.load %arg11[%c0_74, %c32_75] : memref<1x64xf32, #tpu.memory_space<vmem>>, vector<1x32xf32>
    tpu.vector_store %arg11[%c0_74, %c32_75], %141 {strides = array<i32>} : memref<1x64xf32, #tpu.memory_space<vmem>>, vector<1x32xf32>,
    %144 = arith.index_cast %c4_i32 : i32 to index
    %c0_76 = arith.constant 0 : index
    %145 = vector.load %arg12[%144, %c0_76] : memref<8x32xf32, #tpu.memory_space<vmem>>, vector<1x32xf32>
    tpu.vector_store %arg12[%144, %c0_76], %141 {strides = array<i32>} : memref<8x32xf32, #tpu.memory_space<vmem>>, vector<1x32xf32>,
    %c5_i32 = arith.constant 5 : i32
    %146 = arith.index_cast %c5_i32 : i32 to index
    %147 = memref.load %arg1[%146] : memref<8xi32, #tpu.memory_space<smem>>
    %148 = arith.index_cast %147 : i32 to index
    %c0_77 = arith.constant 0 : index
    %149 = vector.load %arg2[%148, %c0_77] : memref<128x32xf32, #tpu.memory_space<vmem>>, vector<1x32xf32>
    %c0_78 = arith.constant 0 : index
    %c0_79 = arith.constant 0 : index
    %150 = vector.load %arg11[%c0_78, %c0_79] : memref<1x64xf32, #tpu.memory_space<vmem>>, vector<1x32xf32>
    tpu.vector_store %arg11[%c0_78, %c0_79], %149 {strides = array<i32>} : memref<1x64xf32, #tpu.memory_space<vmem>>, vector<1x32xf32>,
    %c0_80 = arith.constant 0 : index
    %c0_81 = arith.constant 0 : index
    %151 = vector.load %arg11[%c0_80, %c0_81] : memref<1x64xf32, #tpu.memory_space<vmem>>, vector<1x64xf32>
    %cst_82 = arith.constant dense<0.000000e+00> : vector<1x128xf32>
    %152 = tpu.matmul %151, %4, %cst_82 {dimension_numbers = #tpu.dot_dimension_numbers<[1], [0], [0], [1], [0, 0, 1, 1], [], []>} : vector<1x64xf32>, vector<64x128xf32>, vector<1x128xf32> -> vector<1x128xf32>
    %153 = arith.addf %152, %5 : vector<1x128xf32>
    %154 = arith.negf %153 : vector<1x128xf32>
    %155 = math.exp %154 : vector<1x128xf32>
    %cst_83 = arith.constant 1.000000e+00 : f32
    %156 = vector.broadcast %cst_83 : f32 to vector<1x128xf32>
    %157 = arith.addf %156, %155 : vector<1x128xf32>
    %158 = arith.divf %156, %157 : vector<1x128xf32>
    %159 = math.tanh %153 : vector<1x128xf32>
    %160 = vector.extract_strided_slice %158 {offsets = [0, 32], sizes = [1, 32], strides = [1, 1]} : vector<1x128xf32> to vector<1x32xf32>
    %c0_84 = arith.constant 0 : index
    %c0_85 = arith.constant 0 : index
    %161 = vector.load %arg13[%c0_84, %c0_85] : memref<1x32xf32, #tpu.memory_space<vmem>>, vector<1x32xf32>
    %162 = arith.mulf %160, %161 : vector<1x32xf32>
    %163 = vector.extract_strided_slice %158 {offsets = [0, 0], sizes = [1, 32], strides = [1, 1]} : vector<1x128xf32> to vector<1x32xf32>
    %164 = vector.extract_strided_slice %159 {offsets = [0, 64], sizes = [1, 32], strides = [1, 1]} : vector<1x128xf32> to vector<1x32xf32>
    %165 = arith.mulf %163, %164 : vector<1x32xf32>
    %166 = arith.addf %162, %165 : vector<1x32xf32>
    %167 = vector.extract_strided_slice %158 {offsets = [0, 96], sizes = [1, 32], strides = [1, 1]} : vector<1x128xf32> to vector<1x32xf32>
    %168 = math.tanh %166 : vector<1x32xf32>
    %169 = arith.mulf %167, %168 : vector<1x32xf32>
    %c0_86 = arith.constant 0 : index
    %c0_87 = arith.constant 0 : index
    %170 = vector.load %arg13[%c0_86, %c0_87] : memref<1x32xf32, #tpu.memory_space<vmem>>, vector<1x32xf32>
    tpu.vector_store %arg13[%c0_86, %c0_87], %166 {strides = array<i32>} : memref<1x32xf32, #tpu.memory_space<vmem>>, vector<1x32xf32>,
    %c0_88 = arith.constant 0 : index
    %c32_89 = arith.constant 32 : index
    %171 = vector.load %arg11[%c0_88, %c32_89] : memref<1x64xf32, #tpu.memory_space<vmem>>, vector<1x32xf32>
    tpu.vector_store %arg11[%c0_88, %c32_89], %169 {strides = array<i32>} : memref<1x64xf32, #tpu.memory_space<vmem>>, vector<1x32xf32>,
    %172 = arith.index_cast %c5_i32 : i32 to index
    %c0_90 = arith.constant 0 : index
    %173 = vector.load %arg12[%172, %c0_90] : memref<8x32xf32, #tpu.memory_space<vmem>>, vector<1x32xf32>
    tpu.vector_store %arg12[%172, %c0_90], %169 {strides = array<i32>} : memref<8x32xf32, #tpu.memory_space<vmem>>, vector<1x32xf32>,
    %c6_i32 = arith.constant 6 : i32
    %174 = arith.index_cast %c6_i32 : i32 to index
    %175 = memref.load %arg1[%174] : memref<8xi32, #tpu.memory_space<smem>>
    %176 = arith.index_cast %175 : i32 to index
    %c0_91 = arith.constant 0 : index
    %177 = vector.load %arg2[%176, %c0_91] : memref<128x32xf32, #tpu.memory_space<vmem>>, vector<1x32xf32>
    %c0_92 = arith.constant 0 : index
    %c0_93 = arith.constant 0 : index
    %178 = vector.load %arg11[%c0_92, %c0_93] : memref<1x64xf32, #tpu.memory_space<vmem>>, vector<1x32xf32>
    tpu.vector_store %arg11[%c0_92, %c0_93], %177 {strides = array<i32>} : memref<1x64xf32, #tpu.memory_space<vmem>>, vector<1x32xf32>,
    %c0_94 = arith.constant 0 : index
    %c0_95 = arith.constant 0 : index
    %179 = vector.load %arg11[%c0_94, %c0_95] : memref<1x64xf32, #tpu.memory_space<vmem>>, vector<1x64xf32>
    %cst_96 = arith.constant dense<0.000000e+00> : vector<1x128xf32>
    %180 = tpu.matmul %179, %4, %cst_96 {dimension_numbers = #tpu.dot_dimension_numbers<[1], [0], [0], [1], [0, 0, 1, 1], [], []>} : vector<1x64xf32>, vector<64x128xf32>, vector<1x128xf32> -> vector<1x128xf32>
    %181 = arith.addf %180, %5 : vector<1x128xf32>
    %182 = arith.negf %181 : vector<1x128xf32>
    %183 = math.exp %182 : vector<1x128xf32>
    %cst_97 = arith.constant 1.000000e+00 : f32
    %184 = vector.broadcast %cst_97 : f32 to vector<1x128xf32>
    %185 = arith.addf %184, %183 : vector<1x128xf32>
    %186 = arith.divf %184, %185 : vector<1x128xf32>
    %187 = math.tanh %181 : vector<1x128xf32>
    %188 = vector.extract_strided_slice %186 {offsets = [0, 32], sizes = [1, 32], strides = [1, 1]} : vector<1x128xf32> to vector<1x32xf32>
    %c0_98 = arith.constant 0 : index
    %c0_99 = arith.constant 0 : index
    %189 = vector.load %arg13[%c0_98, %c0_99] : memref<1x32xf32, #tpu.memory_space<vmem>>, vector<1x32xf32>
    %190 = arith.mulf %188, %189 : vector<1x32xf32>
    %191 = vector.extract_strided_slice %186 {offsets = [0, 0], sizes = [1, 32], strides = [1, 1]} : vector<1x128xf32> to vector<1x32xf32>
    %192 = vector.extract_strided_slice %187 {offsets = [0, 64], sizes = [1, 32], strides = [1, 1]} : vector<1x128xf32> to vector<1x32xf32>
    %193 = arith.mulf %191, %192 : vector<1x32xf32>
    %194 = arith.addf %190, %193 : vector<1x32xf32>
    %195 = vector.extract_strided_slice %186 {offsets = [0, 96], sizes = [1, 32], strides = [1, 1]} : vector<1x128xf32> to vector<1x32xf32>
    %196 = math.tanh %194 : vector<1x32xf32>
    %197 = arith.mulf %195, %196 : vector<1x32xf32>
    %c0_100 = arith.constant 0 : index
    %c0_101 = arith.constant 0 : index
    %198 = vector.load %arg13[%c0_100, %c0_101] : memref<1x32xf32, #tpu.memory_space<vmem>>, vector<1x32xf32>
    tpu.vector_store %arg13[%c0_100, %c0_101], %194 {strides = array<i32>} : memref<1x32xf32, #tpu.memory_space<vmem>>, vector<1x32xf32>,
    %c0_102 = arith.constant 0 : index
    %c32_103 = arith.constant 32 : index
    %199 = vector.load %arg11[%c0_102, %c32_103] : memref<1x64xf32, #tpu.memory_space<vmem>>, vector<1x32xf32>
    tpu.vector_store %arg11[%c0_102, %c32_103], %197 {strides = array<i32>} : memref<1x64xf32, #tpu.memory_space<vmem>>, vector<1x32xf32>,
    %200 = arith.index_cast %c6_i32 : i32 to index
    %c0_104 = arith.constant 0 : index
    %201 = vector.load %arg12[%200, %c0_104] : memref<8x32xf32, #tpu.memory_space<vmem>>, vector<1x32xf32>
    tpu.vector_store %arg12[%200, %c0_104], %197 {strides = array<i32>} : memref<8x32xf32, #tpu.memory_space<vmem>>, vector<1x32xf32>,
    %c7_i32 = arith.constant 7 : i32
    %202 = arith.index_cast %c7_i32 : i32 to index
    %203 = memref.load %arg1[%202] : memref<8xi32, #tpu.memory_space<smem>>
    %204 = arith.index_cast %203 : i32 to index
    %c0_105 = arith.constant 0 : index
    %205 = vector.load %arg2[%204, %c0_105] : memref<128x32xf32, #tpu.memory_space<vmem>>, vector<1x32xf32>
    %c0_106 = arith.constant 0 : index
    %c0_107 = arith.constant 0 : index
    %206 = vector.load %arg11[%c0_106, %c0_107] : memref<1x64xf32, #tpu.memory_space<vmem>>, vector<1x32xf32>
    tpu.vector_store %arg11[%c0_106, %c0_107], %205 {strides = array<i32>} : memref<1x64xf32, #tpu.memory_space<vmem>>, vector<1x32xf32>,
    %c0_108 = arith.constant 0 : index
    %c0_109 = arith.constant 0 : index
    %207 = vector.load %arg11[%c0_108, %c0_109] : memref<1x64xf32, #tpu.memory_space<vmem>>, vector<1x64xf32>
    %cst_110 = arith.constant dense<0.000000e+00> : vector<1x128xf32>
    %208 = tpu.matmul %207, %4, %cst_110 {dimension_numbers = #tpu.dot_dimension_numbers<[1], [0], [0], [1], [0, 0, 1, 1], [], []>} : vector<1x64xf32>, vector<64x128xf32>, vector<1x128xf32> -> vector<1x128xf32>
    %209 = arith.addf %208, %5 : vector<1x128xf32>
    %210 = arith.negf %209 : vector<1x128xf32>
    %211 = math.exp %210 : vector<1x128xf32>
    %cst_111 = arith.constant 1.000000e+00 : f32
    %212 = vector.broadcast %cst_111 : f32 to vector<1x128xf32>
    %213 = arith.addf %212, %211 : vector<1x128xf32>
    %214 = arith.divf %212, %213 : vector<1x128xf32>
    %215 = math.tanh %209 : vector<1x128xf32>
    %216 = vector.extract_strided_slice %214 {offsets = [0, 32], sizes = [1, 32], strides = [1, 1]} : vector<1x128xf32> to vector<1x32xf32>
    %c0_112 = arith.constant 0 : index
    %c0_113 = arith.constant 0 : index
    %217 = vector.load %arg13[%c0_112, %c0_113] : memref<1x32xf32, #tpu.memory_space<vmem>>, vector<1x32xf32>
    %218 = arith.mulf %216, %217 : vector<1x32xf32>
    %219 = vector.extract_strided_slice %214 {offsets = [0, 0], sizes = [1, 32], strides = [1, 1]} : vector<1x128xf32> to vector<1x32xf32>
    %220 = vector.extract_strided_slice %215 {offsets = [0, 64], sizes = [1, 32], strides = [1, 1]} : vector<1x128xf32> to vector<1x32xf32>
    %221 = arith.mulf %219, %220 : vector<1x32xf32>
    %222 = arith.addf %218, %221 : vector<1x32xf32>
    %223 = vector.extract_strided_slice %214 {offsets = [0, 96], sizes = [1, 32], strides = [1, 1]} : vector<1x128xf32> to vector<1x32xf32>
    %224 = math.tanh %222 : vector<1x32xf32>
    %225 = arith.mulf %223, %224 : vector<1x32xf32>
    %c0_114 = arith.constant 0 : index
    %c0_115 = arith.constant 0 : index
    %226 = vector.load %arg13[%c0_114, %c0_115] : memref<1x32xf32, #tpu.memory_space<vmem>>, vector<1x32xf32>
    tpu.vector_store %arg13[%c0_114, %c0_115], %222 {strides = array<i32>} : memref<1x32xf32, #tpu.memory_space<vmem>>, vector<1x32xf32>,
    %c0_116 = arith.constant 0 : index
    %c32_117 = arith.constant 32 : index
    %227 = vector.load %arg11[%c0_116, %c32_117] : memref<1x64xf32, #tpu.memory_space<vmem>>, vector<1x32xf32>
    tpu.vector_store %arg11[%c0_116, %c32_117], %225 {strides = array<i32>} : memref<1x64xf32, #tpu.memory_space<vmem>>, vector<1x32xf32>,
    %228 = arith.index_cast %c7_i32 : i32 to index
    %c0_118 = arith.constant 0 : index
    %229 = vector.load %arg12[%228, %c0_118] : memref<8x32xf32, #tpu.memory_space<vmem>>, vector<1x32xf32>
    tpu.vector_store %arg12[%228, %c0_118], %225 {strides = array<i32>} : memref<8x32xf32, #tpu.memory_space<vmem>>, vector<1x32xf32>,
    %c8_i32 = arith.constant 8 : i32
    %c0_119 = arith.constant 0 : index
    %c0_120 = arith.constant 0 : index
    %230 = vector.load %arg12[%c0_119, %c0_120] : memref<8x32xf32, #tpu.memory_space<vmem>>, vector<8x32xf32>
    %c0_121 = arith.constant 0 : index
    %c0_122 = arith.constant 0 : index
    %231 = vector.load %arg5[%c0_121, %c0_122] : memref<32x128xf32, #tpu.memory_space<vmem>>, vector<32x128xf32>
    %cst_123 = arith.constant dense<0.000000e+00> : vector<8x128xf32>
    %232 = tpu.matmul %230, %231, %cst_123 {dimension_numbers = #tpu.dot_dimension_numbers<[1], [0], [0], [1], [0, 0, 1, 1], [], []>} : vector<8x32xf32>, vector<32x128xf32>, vector<8x128xf32> -> vector<8x128xf32>
    %c4 = arith.constant 4 : index
    %c0_124 = arith.constant 0 : index
    %233 = vector.load %arg7[%c4, %c0_124] : memref<8x128xf32, #tpu.memory_space<vmem>>, vector<1x128xf32>
    %234 = vector.broadcast %233 : vector<1x128xf32> to vector<8x128xf32>
    %235 = arith.addf %232, %234 : vector<8x128xf32>
    %c0_125 = arith.constant 0 : index
    %c0_126 = arith.constant 0 : index
    %236 = vector.load %arg8[%c0_125, %c0_126] : memref<8x128xf32, #tpu.memory_space<vmem>>, vector<8x128xf32>
    tpu.vector_store %arg8[%c0_125, %c0_126], %235 {strides = array<i32>} : memref<8x128xf32, #tpu.memory_space<vmem>>, vector<8x128xf32>,
    %c0_127 = arith.constant 0 : index
    %c0_128 = arith.constant 0 : index
    %237 = vector.load %arg4[%c0_127, %c0_128] : memref<32x8xf32, #tpu.memory_space<vmem>>, vector<32x8xf32>
    %cst_129 = arith.constant dense<0.000000e+00> : vector<8x8xf32>
    %238 = tpu.matmul %230, %237, %cst_129 {dimension_numbers = #tpu.dot_dimension_numbers<[1], [0], [0], [1], [0, 0, 1, 1], [], []>} : vector<8x32xf32>, vector<32x8xf32>, vector<8x8xf32> -> vector<8x8xf32>
    %cst_130 = arith.constant dense<0xFF800000> : vector<8xf32>
    %239 = vector.multi_reduction <maximumf>, %238, %cst_130 [1] : vector<8x8xf32> to vector<8xf32>
    %240 = vector.shape_cast %239 : vector<8xf32> to vector<8x1xf32>
    %241 = vector.broadcast %240 : vector<8x1xf32> to vector<8x8xf32>
    %242 = arith.subf %238, %241 : vector<8x8xf32>
    %243 = math.exp %242 : vector<8x8xf32>
    %cst_131 = arith.constant dense<0.000000e+00> : vector<8xf32>
    %244 = vector.multi_reduction <add>, %243, %cst_131 [1] : vector<8x8xf32> to vector<8xf32>
    %245 = vector.shape_cast %244 : vector<8xf32> to vector<8x1xf32>
    %246 = vector.broadcast %245 : vector<8x1xf32> to vector<8x8xf32>
    %247 = arith.divf %243, %246 : vector<8x8xf32>
    %c0_132 = arith.constant 0 : index
    %c0_133 = arith.constant 0 : index
    %248 = vector.load %arg6[%c0_132, %c0_133] : memref<8x32xf32, #tpu.memory_space<vmem>>, vector<8x32xf32>
    %cst_134 = arith.constant dense<0.000000e+00> : vector<8x32xf32>
    %249 = tpu.matmul %247, %248, %cst_134 {dimension_numbers = #tpu.dot_dimension_numbers<[1], [0], [0], [1], [0, 0, 1, 1], [], []>} : vector<8x8xf32>, vector<8x32xf32>, vector<8x32xf32> -> vector<8x32xf32>
    %c1 = arith.constant 1 : index
    %c0_135 = arith.constant 0 : index
    %250 = vector.load %arg7[%c1, %c0_135] : memref<8x128xf32, #tpu.memory_space<vmem>>, vector<1x32xf32>
    %251 = vector.broadcast %250 : vector<1x32xf32> to vector<8x32xf32>
    %252 = arith.mulf %230, %251 : vector<8x32xf32>
    %cst_136 = arith.constant dense<0.000000e+00> : vector<8xf32>
    %253 = vector.multi_reduction <add>, %252, %cst_136 [1] : vector<8x32xf32> to vector<8xf32>
    %254 = vector.shape_cast %253 : vector<8xf32> to vector<8x1xf32>
    %c2 = arith.constant 2 : index
    %c0_137 = arith.constant 0 : index
    %255 = vector.load %arg7[%c2, %c0_137] : memref<8x128xf32, #tpu.memory_space<vmem>>, vector<1x32xf32>
    %256 = vector.broadcast %255 : vector<1x32xf32> to vector<8x32xf32>
    %257 = arith.mulf %249, %256 : vector<8x32xf32>
    %cst_138 = arith.constant dense<0.000000e+00> : vector<8xf32>
    %258 = vector.multi_reduction <add>, %257, %cst_138 [1] : vector<8x32xf32> to vector<8xf32>
    %259 = vector.shape_cast %258 : vector<8xf32> to vector<8x1xf32>
    %260 = arith.addf %254, %259 : vector<8x1xf32>
    %c3 = arith.constant 3 : index
    %c0_139 = arith.constant 0 : index
    %261 = vector.load %arg7[%c3, %c0_139] : memref<8x128xf32, #tpu.memory_space<vmem>>, vector<1x1xf32>
    %262 = vector.broadcast %261 : vector<1x1xf32> to vector<8x1xf32>
    %263 = arith.addf %260, %262 : vector<8x1xf32>
    %264 = arith.negf %263 : vector<8x1xf32>
    %265 = math.exp %264 : vector<8x1xf32>
    %cst_140 = arith.constant 1.000000e+00 : f32
    %266 = vector.broadcast %cst_140 : f32 to vector<8x1xf32>
    %267 = arith.addf %266, %265 : vector<8x1xf32>
    %268 = arith.divf %266, %267 : vector<8x1xf32>
    %cst_141 = arith.constant 0.000000e+00 : f32
    %269 = vector.broadcast %cst_141 : f32 to vector<8x119xf32>
    %270 = tpu.concatenate %247, %268, %269 in 1 : vector<8x8xf32>, vector<8x1xf32>, vector<8x119xf32> -> vector<8x128xf32>
    %c0_142 = arith.constant 0 : index
    %c0_143 = arith.constant 0 : index
    %271 = vector.load %arg9[%c0_142, %c0_143] : memref<8x128xf32, #tpu.memory_space<vmem>>, vector<8x128xf32>
    tpu.vector_store %arg9[%c0_142, %c0_143], %270 {strides = array<i32>} : memref<8x128xf32, #tpu.memory_space<vmem>>, vector<8x128xf32>,
    %272 = vector.extract_strided_slice %230 {offsets = [7, 0], sizes = [1, 32], strides = [1, 1]} : vector<8x32xf32> to vector<1x32xf32>
    %c0_144 = arith.constant 0 : index
    %c0_145 = arith.constant 0 : index
    %273 = vector.load %arg13[%c0_144, %c0_145] : memref<1x32xf32, #tpu.memory_space<vmem>>, vector<1x32xf32>
    %cst_146 = arith.constant 0.000000e+00 : f32
    %274 = vector.broadcast %cst_146 : f32 to vector<1x64xf32>
    %275 = tpu.concatenate %272, %273, %274 in 1 : vector<1x32xf32>, vector<1x32xf32>, vector<1x64xf32> -> vector<1x128xf32>
    %c0_147 = arith.constant 0 : index
    %c0_148 = arith.constant 0 : index
    %276 = vector.load %arg10[%c0_147, %c0_148] : memref<1x128xf32, #tpu.memory_space<vmem>>, vector<1x128xf32>
    tpu.vector_store %arg10[%c0_147, %c0_148], %275 {strides = array<i32>} : memref<1x128xf32, #tpu.memory_space<vmem>>, vector<1x128xf32>,
    return
  }
  func.func @transform_0(%arg0: i32, %arg1: memref<8xi32, #tpu.memory_space<smem>>) -> (i32, i32) {
    %c0_i32 = arith.constant 0 : i32
    %c0_i32_0 = arith.constant 0 : i32
    %c0_i32_1 = arith.constant 0 : i32
    return %c0_i32, %c0_i32_0 : i32, i32
  }
  func.func @transform_1(%arg0: i32, %arg1: memref<8xi32, #tpu.memory_space<smem>>) -> (i32, i32) {
    %c0_i32 = arith.constant 0 : i32
    %c0_i32_0 = arith.constant 0 : i32
    %c0_i32_1 = arith.constant 0 : i32
    return %c0_i32, %c0_i32_0 : i32, i32
  }
  func.func @transform_2(%arg0: i32, %arg1: memref<8xi32, #tpu.memory_space<smem>>) -> (i32, i32) {
    %c0_i32 = arith.constant 0 : i32
    %c0_i32_0 = arith.constant 0 : i32
    %c0_i32_1 = arith.constant 0 : i32
    return %c0_i32, %c0_i32_0 : i32, i32
  }
  func.func @transform_3(%arg0: i32, %arg1: memref<8xi32, #tpu.memory_space<smem>>) -> (i32, i32) {
    %c0_i32 = arith.constant 0 : i32
    %c0_i32_0 = arith.constant 0 : i32
    %c0_i32_1 = arith.constant 0 : i32
    return %c0_i32, %c0_i32_0 : i32, i32
  }
  func.func @transform_4(%arg0: i32, %arg1: memref<8xi32, #tpu.memory_space<smem>>) -> (i32, i32) {
    %c0_i32 = arith.constant 0 : i32
    %c0_i32_0 = arith.constant 0 : i32
    %c0_i32_1 = arith.constant 0 : i32
    return %c0_i32, %c0_i32_0 : i32, i32
  }
  func.func @transform_5(%arg0: i32, %arg1: memref<8xi32, #tpu.memory_space<smem>>) -> (i32, i32) {
    %c0_i32 = arith.constant 0 : i32
    %c0_i32_0 = arith.constant 0 : i32
    %c0_i32_1 = arith.constant 0 : i32
    return %c0_i32, %c0_i32_0 : i32, i32
  }
  func.func @transform_6(%arg0: i32, %arg1: memref<8xi32, #tpu.memory_space<smem>>) -> (i32, i32) {
    %c0_i32 = arith.constant 0 : i32
    %c0_i32_0 = arith.constant 0 : i32
    %c0_i32_1 = arith.constant 0 : i32
    return %c0_i32, %c0_i32_0 : i32, i32
  }
  func.func @transform_7(%arg0: i32, %arg1: memref<8xi32, #tpu.memory_space<smem>>) -> (i32, i32) {
    %c0_i32 = arith.constant 0 : i32
    %c0_i32_0 = arith.constant 0 : i32
    %c0_i32_1 = arith.constant 0 : i32
    return %c0_i32, %c0_i32_0 : i32, i32
  }
  func.func @transform_8(%arg0: i32, %arg1: memref<8xi32, #tpu.memory_space<smem>>) -> (i32, i32) {
    %c0_i32 = arith.constant 0 : i32
    %c0_i32_0 = arith.constant 0 : i32
    %c0_i32_1 = arith.constant 0 : i32
    return %c0_i32, %c0_i32_0 : i32, i32
  }
}

</mosaic_0001>

<bundles_post_ra>
// kernel: tpu_custom_call.1
= control target key start
LH: loop header
LB: loop body
LE: loop exit
PB: predicated region body
PF: predicated region fallthrough
CT: control target
= control target key end

     0   :  { %s2427_s0 = inlined_call_operand.vmem [shape: s32[8], index: 0, kind: input, shape index: {}]   ;;  %s2428_s1 = inlined_call_operand.vmem [shape: f32[128,32], index: 1, kind: input, shape index: {}]   ;;  %s2429_s2 = inlined_call_operand.vmem [shape: f32[64,128], index: 2, kind: input, shape index: {}]   ;;  %s2430_s3 = inlined_call_operand.vmem [shape: f32[32,8], index: 3, kind: input, shape index: {}]   ;;  %s2431_s4 = inlined_call_operand.vmem [shape: f32[32,128], index: 4, kind: input, shape index: {}]   ;;  %s2432_s5 = inlined_call_operand.vmem [shape: f32[8,32], index: 5, kind: input, shape index: {}]   ;;  %s2433_s6 = inlined_call_operand.vmem [shape: f32[8,128], index: 6, kind: input, shape index: {}]   ;;  %s2434_s7 = inlined_call_operand.hbm [shape: f32[8,128], index: 7, kind: output, shape index: {0}]   ;;  %s2435_s8 = inlined_call_operand.hbm [shape: f32[8,128], index: 8, kind: output, shape index: {1}]   ;;  %s2436_s9 = inlined_call_operand.hbm [shape: f32[1,128], index: 9, kind: output, shape index: {2}]  }
   0x1   :  { %s15_s11 = sshll.u32 %s2427_s0, 4  ;;  %s16_s11 = int_to_ptr.vmem [resolvable:$true] %s15_s11 }
   0x2   :  { %s1894_s12 = scalar_lea.vmem %s16_s11, 16  ;;  %p1899_p1 = scmp.lt.s32.totalorder %s16_s11, %s16_s11 }
   0x3   :  { %p1895_p0 = scmp.ne.s32.totalorder %s16_s11, %s1894_s12  ;;  %p1900_p2 = scmp.lt.s32.totalorder %s1894_s12, %s1894_s12 }
   0x5   :  { %p1901_p3 = por %p1900_p2, %p1899_p1 }
   0x7   :  { %p1902_p4 = pnand %p1901_p3, %p1895_p0 }
   0x9   :  { %1905 = shalt.err (!%p1902_p4)  }
   0xa   :  { %s1978_s13 = smov [#allocation6]  }
   0xb   :  { %18 = dma.vmem_to_smem %s16_s11, 16, %s1978_s13, [#allocation5] }
   0xc   :  { %1972 = dma.done.wait [#allocation5], 16 }
   0xd   :  { %1973 = vsyncadd [#allocation5], 4294967280 }
   0xe   :  { %20 = sfence }
   0xf   :  { %21 = vsyncpa [#allocation8], 0  ;;  %v35_v0 = vld [vmem:[%s2433_s6 + $0x5] sm:$0x1]  ;;  %v46_v2 = vld [vmem:[%s2429_s2 + $0x8] sm:$0xff]  ;;  %s1979_s19 = smov 32  }
  0x10   :  { %v45_v1 = vld [vmem:[%s2429_s2] sm:$0xff]  ;;  %37 = vrot.lane.b32.xlu0 %v35_v0, %s1979_s19  ;;  %v1980_v3 = vmov 0.0|0.0   ;;  %v47_v5 = vld [vmem:[%s2429_s2 + $0x10] sm:$0xff]  ;;  %v48_v6 = vld [vmem:[%s2429_s2 + $0x18] sm:$0xff]  ;;  %vm43_vm0 = vcmask 253952   ;;  %vm1981_vm1 = vmmov 0  }
  0x11   :  { %1703 = vmatprep.subr.bf16.mxu0 %v1980_v3  ;;  %v2053_v4 = vpack.c.bf16 %v46_v2, %v45_v1  ;;  %1715 = vmatprep.subr.bf16.mxu1 %v1980_v3  ;;  %v2063_v7 = vpack.c.bf16 %v48_v6, %v47_v5  ;;  %v1982_v8 = vmov 0.0   ;;  %v42_v9 = vld [vmem:[%s2433_s6 + $0x6] sm:$0x1]  ;;  %v50_v11 = vld [vmem:[%s2429_s2 + $0x28] sm:$0xff] }
  0x12   :  { %1540 = vmatprep.mubr.msk.f32.mxu0 %vm1981_vm1, %v1982_v8  ;;  %v49_v10 = vld [vmem:[%s2429_s2 + $0x20] sm:$0xff]  ;;  %44 = vst.msk [vmem:[#allocation4] sm:$0x1] %vm43_vm0, %v42_v9 }
  0x13   :  { %1705 = vmatpush3.bf16.msra.mxu0 %v2053_v4  ;;  %1717 = vmatpush3.bf16.msra.mxu1 %v2053_v4 }
  0x14   :  { %1706 = vmatprep.subr.bf16.mxu0 %v1980_v3 }
  0x15   :  { %22 = vsyncpa [#allocation10], 0  ;;  %1718 = vmatprep.subr.bf16.mxu1 %v1980_v3  ;;  %1559 = vmatprep.mubr.msk.f32.mxu1 %vm1981_vm1, %v1982_v8  ;;  %v2083_v12 = vpack.c.bf16 %v50_v11, %v49_v10  ;;  %v51_v13 = vld [vmem:[%s2429_s2 + $0x30] sm:$0xff]  ;;  %v52_v14 = vld [vmem:[%s2429_s2 + $0x38] sm:$0xff]  ;;  %s54_s2 = sld [smem:[#allocation6]]  ;;  %vm40_vm2 = vcmask 516352  }
  0x16   :  { %v2095_v15 = vpack.c.bf16 %v52_v14, %v51_v13  ;;  %vm59_vm3 = vcmask 523264   ;;  %v2124_v20 = vld [vmem:[%s2433_s6] sm:$0x1]  ;;  %s1983_s17 = smov 64   ;;  %s1984_s18 = smov 96   ;;  %vm1065_vm4 = vcmask 261120  }
  0x17   :  { %1708 = vmatpush3.bf16.msra.mxu0 %v2063_v7  ;;  %1720 = vmatpush3.bf16.msra.mxu1 %v2063_v7  ;;  %s1403_s20 = sld [smem:[#allocation6 + $0x1]]  ;;  %s1407_s24 = sld [smem:[#allocation6 + $0x2]]  ;;  %vm1214_vm5 = vcmask 64512  }
  0x18   :  { %1709 = vmatprep.subr.bf16.mxu0 %v1980_v3  ;;  %1721 = vmatprep.subr.bf16.mxu1 %v1980_v3  ;;  %s1411_s28 = sld [smem:[#allocation6 + $0x3]]  ;;  %s1415_s11 = sld [smem:[#allocation6 + $0x4]] }
  0x19   :  { %v1402_v16 = vld [vmem:[#allocation4] ss:$0 sm:$0xff]  ;;  %s1419_s14 = sld [smem:[#allocation6 + $0x5]] }
  0x1a   :  { %146 = vrot.lane.b32.xlu1 %v1402_v16, %s1979_s19 }
  0x1b   :  { %1711 = vmatpush3.bf16.msra.mxu0 %v2083_v12  ;;  %1723 = vmatpush3.bf16.msra.mxu1 %v2083_v12  ;;  %s55_s15 = scalar_lea.vmem %s2428_s1, %s54_s2 }
  0x1c   :  { %1712 = vmatprep.subr.bf16.mxu0 %v1980_v3  ;;  %1724 = vmatprep.subr.bf16.mxu1 %v1980_v3  ;;  %v56_v17 = vld [vmem:[%s55_s15] sm:$0x1] }
  0x1d   :  { %s181_s23 = scalar_lea.vmem %s2428_s1, %s1403_s20  ;;  %s306_s27 = scalar_lea.vmem %s2428_s1, %s1407_s24 }
  0x1e   :  { %v182_v40 = vld [vmem:[%s181_s23] sm:$0x1]  ;;  %s431_s10 = scalar_lea.vmem %s2428_s1, %s1411_s28  ;;  %s556_s13 = scalar_lea.vmem %s2428_s1, %s1415_s11 }
  0x1f   :  { %1714 = vmatpush3.bf16.msra.mxu0 %v2095_v15  ;;  %1726 = vmatpush3.bf16.msra.mxu1 %v2095_v15  ;;  %v307_v62 = vld [vmem:[%s306_s27] sm:$0x1]  ;;  %s681_s0 = scalar_lea.vmem %s2428_s1, %s1419_s14  ;;  %s1423_s20 = sld [smem:[#allocation6 + $0x6]] }
  0x20   :  { %1727 = vmatprep.subr.bf16.mxu0 %v1980_v3  ;;  %1739 = vmatprep.subr.bf16.mxu1 %v1980_v3  ;;  %s1427_s24 = sld [smem:[#allocation6 + $0x7]] }
  0x25   :  { %s806_s23 = scalar_lea.vmem %s2428_s1, %s1423_s20 }
  0x26   :  { %s931_s27 = scalar_lea.vmem %s2428_s1, %s1427_s24  ;;  %s1985_s1 = smov [#allocation7]  }
  0x27   :  { %s1357_s28 = sshll.u32 %s1985_s1, 4  ;;  %s1358_s28 = int_to_ptr.vmem [resolvable:$true] %s1357_s28 }
  0x28   :  { %s1906_s29 = scalar_lea.vmem %s1358_s28, 128  ;;  %p1911_p6 = scmp.lt.s32.totalorder %s1358_s28, %s1358_s28 }
  0x29   :  { %p1907_p5 = scmp.ne.s32.totalorder %s1358_s28, %s1906_s29  ;;  %p1912_p7 = scmp.lt.s32.totalorder %s1906_s29, %s1906_s29 }
  0x2b   :  { %p1913_p8 = por %p1912_p7, %p1911_p6 }
  0x2d   :  { %p1914_p9 = pnand %p1913_p8, %p1907_p5 }
  0x82   :  { %v38_v18 = vpop.permute.xlu0 %37 }
  0x83   :  { %41 = vst.msk [vmem:[#allocation2] sm:$0x1] %vm40_vm2, %v38_v18 }
  0x84   :  { %57 = vst.msk [vmem:[#allocation2] sm:$0x1] %vm43_vm0, %v56_v17 }
  0x8b   :  { %v58_v19 = vld [vmem:[#allocation2] sm:$0x1] }
  0x8c   :  { %1541 = vmatmul.mubr.msk.f32.vlgmr.msra.gmra.mrb[0].mxu0 %vm59_vm3, %v58_v19  ;;  %v147_v31 = vpop.permute.xlu1 %146 }
  0x8d   :  { %1729 = vmatpush3.bf16.msra.mxu0 %v2053_v4  ;;  %1578 = vmatprep.mubr.msk.f32.mxu0 %vm1981_vm1, %v1982_v8 }
  0x8e   :  { %1730 = vmatprep.subr.bf16.mxu0 %v1980_v3 }
  0x91   :  { %1732 = vmatpush3.bf16.msra.mxu0 %v2063_v7 }
  0x92   :  { %1733 = vmatprep.subr.bf16.mxu0 %v1980_v3 }
  0x95   :  { %1735 = vmatpush3.bf16.msra.mxu0 %v2083_v12 }
  0x96   :  { %1736 = vmatprep.subr.bf16.mxu0 %v1980_v3 }
  0x99   :  { %1738 = vmatpush3.bf16.msra.mxu0 %v2095_v15 }
  0x9a   :  { %1751 = vmatprep.subr.bf16.mxu0 %v1980_v3 }
 0x15f   :  { %v129_v21 = vpop.f32.mrb[0].mxu0 }
 0x160   :  { %v130_v22 = vadd.f32 %v129_v21, %v2124_v20  ;;  %v1542_v23 = vpop.f32.mrb[1].mxu0 }
 0x162   :  { %1822 = vtanh.f32 %v130_v22  ;;  %v1401_v25 = vmul.f32 -1.442695, %v130_v22 }
 0x164   :  { %1824 = vpow2.f32 %v1401_v25 }
 0x16c   :  { %v1823_v24 = vpop.eup %1822 }
 0x16d   :  { %151 = vrot.lane.b32.xlu0 %v1823_v24, %s1983_s17 }
 0x16e   :  { %v1825_v26 = vpop.eup %1824 }
 0x16f   :  { %v136_v27 = vadd.f32 1.0, %v1825_v26 }
 0x171   :  { %1826 = vrcp.f32 %v136_v27  ;;  %v432_v27 = vld [vmem:[%s431_s10] sm:$0x1] }
 0x17b   :  { %v1827_v28 = vpop.eup %1826 }
 0x17c   :  { %v149_v32 = vmul.f32 %v1827_v28, %v147_v31 }
 0x1df   :  { %v152_v29 = vpop.permute.xlu0 %151 }
 0x1e0   :  { %v154_v30 = vmul.f32 %v1827_v28, %v152_v29 }
 0x1e2   :  { %156 = vrot.lane.b32.xlu1 %v154_v30, %s1979_s19 }
 0x254   :  { %v157_v33 = vpop.permute.xlu1 %156 }
 0x255   :  { %v159_v34 = vadd.f32 %v157_v33, %v149_v32 }
 0x257   :  { %1828 = vtanh.f32 %v159_v34 }
 0x261   :  { %v1829_v35 = vpop.eup %1828 }
 0x262   :  { %162 = vrot.lane.b32.xlu0 %v1829_v35, %s1983_s17 }
 0x266   :  { %167 = vrot.lane.b32.xlu0 %v159_v34, %s1984_s18 }
 0x2d4   :  { %v163_v36 = vpop.permute.xlu0 %162 }
 0x2d5   :  { %v2131_v37 = vmul.f32 %v1827_v28, %v163_v36 }
 0x2d7   :  { %172 = vrot.lane.b32.xlu1 %v2131_v37, %s1983_s17 }
 0x2d8   :  { %v168_v38 = vpop.permute.xlu0 %167 }
 0x2d9   :  { %170 = vst.msk [vmem:[#allocation4] sm:$0x1] %vm43_vm0, %v168_v38 }
 0x2e0   :  { %v1406_v39 = vld [vmem:[#allocation4] ss:$0 sm:$0xff] }
 0x2e1   :  { %271 = vrot.lane.b32.xlu0 %v1406_v39, %s1979_s19 }
 0x349   :  { %v173_v41 = vpop.permute.xlu1 %172 }
 0x34a   :  { %175 = vst.msk [vmem:[#allocation2] sm:$0x1] %vm40_vm2, %v173_v41 }
 0x34b   :  { %183 = vst.msk [vmem:[#allocation2] sm:$0x1] %vm43_vm0, %v182_v40 }
 0x352   :  { %v184_v42 = vld [vmem:[#allocation2] sm:$0x1] }
 0x353   :  { %1560 = vmatmul.mubr.msk.f32.vlgmr.msra.gmra.mrb[0].mxu1 %vm59_vm3, %v184_v42  ;;  %v272_v53 = vpop.permute.xlu0 %271 }
 0x354   :  { %1741 = vmatpush3.bf16.msra.mxu1 %v2053_v4  ;;  %1597 = vmatprep.mubr.msk.f32.mxu1 %vm1981_vm1, %v1982_v8 }
 0x355   :  { %1742 = vmatprep.subr.bf16.mxu1 %v1980_v3 }
 0x358   :  { %1744 = vmatpush3.bf16.msra.mxu1 %v2063_v7 }
 0x359   :  { %1745 = vmatprep.subr.bf16.mxu1 %v1980_v3 }
 0x35c   :  { %1747 = vmatpush3.bf16.msra.mxu1 %v2083_v12 }
 0x35d   :  { %1748 = vmatprep.subr.bf16.mxu1 %v1980_v3 }
 0x360   :  { %1750 = vmatpush3.bf16.msra.mxu1 %v2095_v15 }
 0x361   :  { %1763 = vmatprep.subr.bf16.mxu1 %v1980_v3 }
 0x426   :  { %v254_v43 = vpop.f32.mrb[0].mxu1 }
 0x427   :  { %v255_v44 = vadd.f32 %v254_v43, %v2124_v20  ;;  %v1561_v45 = vpop.f32.mrb[1].mxu1 }
 0x429   :  { %1830 = vtanh.f32 %v255_v44  ;;  %v1405_v47 = vmul.f32 -1.442695, %v255_v44 }
 0x42b   :  { %1832 = vpow2.f32 %v1405_v47 }
 0x433   :  { %v1831_v46 = vpop.eup %1830 }
 0x434   :  { %276 = vrot.lane.b32.xlu1 %v1831_v46, %s1983_s17 }
 0x435   :  { %v1833_v48 = vpop.eup %1832 }
 0x436   :  { %v261_v49 = vadd.f32 1.0, %v1833_v48 }
 0x438   :  { %1834 = vrcp.f32 %v261_v49 }
 0x442   :  { %v1835_v50 = vpop.eup %1834 }
 0x443   :  { %v274_v54 = vmul.f32 %v1835_v50, %v272_v53 }
 0x4a6   :  { %v277_v51 = vpop.permute.xlu1 %276 }
 0x4a7   :  { %v279_v52 = vmul.f32 %v1835_v50, %v277_v51 }
 0x4a9   :  { %281 = vrot.lane.b32.xlu1 %v279_v52, %s1979_s19 }
 0x51b   :  { %v282_v55 = vpop.permute.xlu1 %281 }
 0x51c   :  { %v284_v56 = vadd.f32 %v282_v55, %v274_v54 }
 0x51e   :  { %1836 = vtanh.f32 %v284_v56 }
 0x528   :  { %v1837_v57 = vpop.eup %1836 }
 0x529   :  { %287 = vrot.lane.b32.xlu0 %v1837_v57, %s1983_s17 }
 0x52d   :  { %292 = vrot.lane.b32.xlu0 %v284_v56, %s1984_s18 }
 0x59b   :  { %v288_v58 = vpop.permute.xlu0 %287 }
 0x59c   :  { %v2158_v59 = vmul.f32 %v1835_v50, %v288_v58  ;;  %v557_v50 = vld [vmem:[%s556_s13] sm:$0x1] }
 0x59e   :  { %297 = vrot.lane.b32.xlu1 %v2158_v59, %s1983_s17 }
 0x59f   :  { %v293_v60 = vpop.permute.xlu0 %292 }
 0x5a0   :  { %295 = vst.msk [vmem:[#allocation4] sm:$0x1] %vm43_vm0, %v293_v60 }
 0x5a7   :  { %v1410_v61 = vld [vmem:[#allocation4] ss:$0 sm:$0xff] }
 0x5a8   :  { %396 = vrot.lane.b32.xlu0 %v1410_v61, %s1979_s19 }
 0x610   :  { %v298_v63 = vpop.permute.xlu1 %297 }
 0x611   :  { %300 = vst.msk [vmem:[#allocation2] sm:$0x1] %vm40_vm2, %v298_v63 }
 0x612   :  { %308 = vst.msk [vmem:[#allocation2] sm:$0x1] %vm43_vm0, %v307_v62 }
 0x619   :  { %v309_v0 = vld [vmem:[#allocation2] sm:$0x1] }
 0x61a   :  { %1579 = vmatmul.mubr.msk.f32.vlgmr.msra.gmra.mrb[2].mxu0 %vm59_vm3, %v309_v0  ;;  %v397_v17 = vpop.permute.xlu0 %396 }
 0x61b   :  { %1753 = vmatpush3.bf16.msra.mxu0 %v2053_v4  ;;  %1616 = vmatprep.mubr.msk.f32.mxu0 %vm1981_vm1, %v1982_v8 }
 0x61c   :  { %1754 = vmatprep.subr.bf16.mxu0 %v1980_v3 }
 0x61f   :  { %1756 = vmatpush3.bf16.msra.mxu0 %v2063_v7 }
 0x620   :  { %1757 = vmatprep.subr.bf16.mxu0 %v1980_v3 }
 0x623   :  { %1759 = vmatpush3.bf16.msra.mxu0 %v2083_v12 }
 0x624   :  { %1760 = vmatprep.subr.bf16.mxu0 %v1980_v3 }
 0x627   :  { %1762 = vmatpush3.bf16.msra.mxu0 %v2095_v15 }
 0x628   :  { %1775 = vmatprep.subr.bf16.mxu0 %v1980_v3 }
 0x6ed   :  { %v379_v1 = vpop.f32.mrb[2].mxu0 }
 0x6ee   :  { %v380_v2 = vadd.f32 %v379_v1, %v2124_v20  ;;  %v1580_v5 = vpop.f32.mrb[3].mxu0 }
 0x6f0   :  { %1838 = vtanh.f32 %v380_v2  ;;  %v1409_v9 = vmul.f32 -1.442695, %v380_v2 }
 0x6f2   :  { %1840 = vpow2.f32 %v1409_v9 }
 0x6fa   :  { %v1839_v6 = vpop.eup %1838 }
 0x6fb   :  { %401 = vrot.lane.b32.xlu1 %v1839_v6, %s1983_s17 }
 0x6fc   :  { %v1841_v10 = vpop.eup %1840 }
 0x6fd   :  { %v386_v11 = vadd.f32 1.0, %v1841_v10 }
 0x6ff   :  { %1842 = vrcp.f32 %v386_v11 }
 0x709   :  { %v1843_v13 = vpop.eup %1842 }
 0x70a   :  { %v399_v18 = vmul.f32 %v1843_v13, %v397_v17 }
 0x76d   :  { %v402_v14 = vpop.permute.xlu1 %401 }
 0x76e   :  { %v404_v16 = vmul.f32 %v1843_v13, %v402_v14  ;;  %v682_v14 = vld [vmem:[%s681_s0] sm:$0x1] }
 0x770   :  { %406 = vrot.lane.b32.xlu1 %v404_v16, %s1979_s19 }
 0x7e2   :  { %v407_v19 = vpop.permute.xlu1 %406 }
 0x7e3   :  { %v409_v21 = vadd.f32 %v407_v19, %v399_v18 }
 0x7e5   :  { %1844 = vtanh.f32 %v409_v21 }
 0x7ef   :  { %v1845_v22 = vpop.eup %1844 }
 0x7f0   :  { %412 = vrot.lane.b32.xlu0 %v1845_v22, %s1983_s17 }
 0x7f4   :  { %417 = vrot.lane.b32.xlu0 %v409_v21, %s1984_s18 }
 0x862   :  { %v413_v23 = vpop.permute.xlu0 %412 }
 0x863   :  { %v2185_v24 = vmul.f32 %v1843_v13, %v413_v23 }
 0x865   :  { %422 = vrot.lane.b32.xlu1 %v2185_v24, %s1983_s17 }
 0x866   :  { %v418_v25 = vpop.permute.xlu0 %417 }
 0x867   :  { %420 = vst.msk [vmem:[#allocation4] sm:$0x1] %vm43_vm0, %v418_v25 }
 0x86e   :  { %v1414_v26 = vld [vmem:[#allocation4] ss:$0 sm:$0xff] }
 0x86f   :  { %521 = vrot.lane.b32.xlu0 %v1414_v26, %s1979_s19 }
 0x8d7   :  { %v423_v28 = vpop.permute.xlu1 %422 }
 0x8d8   :  { %425 = vst.msk [vmem:[#allocation2] sm:$0x1] %vm40_vm2, %v423_v28 }
 0x8d9   :  { %433 = vst.msk [vmem:[#allocation2] sm:$0x1] %vm43_vm0, %v432_v27 }
 0x8e0   :  { %v434_v29 = vld [vmem:[#allocation2] sm:$0x1] }
 0x8e1   :  { %1598 = vmatmul.mubr.msk.f32.vlgmr.msra.gmra.mrb[2].mxu1 %vm59_vm3, %v434_v29  ;;  %v522_v41 = vpop.permute.xlu0 %521 }
 0x8e2   :  { %1765 = vmatpush3.bf16.msra.mxu1 %v2053_v4  ;;  %1635 = vmatprep.mubr.msk.f32.mxu1 %vm1981_vm1, %v1982_v8 }
 0x8e3   :  { %1766 = vmatprep.subr.bf16.mxu1 %v1980_v3 }
 0x8e6   :  { %1768 = vmatpush3.bf16.msra.mxu1 %v2063_v7 }
 0x8e7   :  { %1769 = vmatprep.subr.bf16.mxu1 %v1980_v3 }
 0x8ea   :  { %1771 = vmatpush3.bf16.msra.mxu1 %v2083_v12 }
 0x8eb   :  { %1772 = vmatprep.subr.bf16.mxu1 %v1980_v3 }
 0x8ee   :  { %1774 = vmatpush3.bf16.msra.mxu1 %v2095_v15 }
 0x8ef   :  { %1787 = vmatprep.subr.bf16.mxu1 %v1980_v3 }
 0x9b4   :  { %v504_v30 = vpop.f32.mrb[2].mxu1 }
 0x9b5   :  { %v505_v31 = vadd.f32 %v504_v30, %v2124_v20  ;;  %v1599_v32 = vpop.f32.mrb[3].mxu1 }
 0x9b7   :  { %1846 = vtanh.f32 %v505_v31  ;;  %v1413_v34 = vmul.f32 -1.442695, %v505_v31 }
 0x9b9   :  { %1848 = vpow2.f32 %v1413_v34 }
 0x9c1   :  { %v1847_v33 = vpop.eup %1846 }
 0x9c2   :  { %526 = vrot.lane.b32.xlu1 %v1847_v33, %s1983_s17 }
 0x9c3   :  { %v1849_v35 = vpop.eup %1848 }
 0x9c4   :  { %v511_v36 = vadd.f32 1.0, %v1849_v35  ;;  %v807_v35 = vld [vmem:[%s806_s23] sm:$0x1] }
 0x9c6   :  { %1850 = vrcp.f32 %v511_v36 }
 0x9d0   :  { %v1851_v38 = vpop.eup %1850 }
 0x9d1   :  { %v524_v42 = vmul.f32 %v1851_v38, %v522_v41 }
 0xa34   :  { %v527_v39 = vpop.permute.xlu1 %526 }
 0xa35   :  { %v529_v40 = vmul.f32 %v1851_v38, %v527_v39 }
 0xa37   :  { %531 = vrot.lane.b32.xlu1 %v529_v40, %s1979_s19 }
 0xaa9   :  { %v532_v43 = vpop.permute.xlu1 %531 }
 0xaaa   :  { %v534_v44 = vadd.f32 %v532_v43, %v524_v42 }
 0xaac   :  { %1852 = vtanh.f32 %v534_v44 }
 0xab6   :  { %v1853_v45 = vpop.eup %1852 }
 0xab7   :  { %537 = vrot.lane.b32.xlu0 %v1853_v45, %s1983_s17 }
 0xabb   :  { %542 = vrot.lane.b32.xlu0 %v534_v44, %s1984_s18 }
 0xb29   :  { %v538_v46 = vpop.permute.xlu0 %537 }
 0xb2a   :  { %v2212_v47 = vmul.f32 %v1851_v38, %v538_v46 }
 0xb2c   :  { %547 = vrot.lane.b32.xlu1 %v2212_v47, %s1983_s17 }
 0xb2d   :  { %v543_v48 = vpop.permute.xlu0 %542 }
 0xb2e   :  { %545 = vst.msk [vmem:[#allocation4] sm:$0x1] %vm43_vm0, %v543_v48 }
 0xb35   :  { %v1418_v49 = vld [vmem:[#allocation4] ss:$0 sm:$0xff] }
 0xb36   :  { %646 = vrot.lane.b32.xlu0 %v1418_v49, %s1979_s19 }
 0xb9e   :  { %v548_v51 = vpop.permute.xlu1 %547 }
 0xb9f   :  { %550 = vst.msk [vmem:[#allocation2] sm:$0x1] %vm40_vm2, %v548_v51 }
 0xba0   :  { %558 = vst.msk [vmem:[#allocation2] sm:$0x1] %vm43_vm0, %v557_v50 }
 0xba7   :  { %v559_v52 = vld [vmem:[#allocation2] sm:$0x1] }
 0xba8   :  { %1617 = vmatmul.mubr.msk.f32.vlgmr.msra.gmra.mrb[4].mxu0 %vm59_vm3, %v559_v52  ;;  %v647_v0 = vpop.permute.xlu0 %646 }
 0xba9   :  { %1777 = vmatpush3.bf16.msra.mxu0 %v2053_v4  ;;  %1654 = vmatprep.mubr.msk.f32.mxu0 %vm1981_vm1, %v1982_v8 }
 0xbaa   :  { %1778 = vmatprep.subr.bf16.mxu0 %v1980_v3 }
 0xbad   :  { %1780 = vmatpush3.bf16.msra.mxu0 %v2063_v7 }
 0xbae   :  { %1781 = vmatprep.subr.bf16.mxu0 %v1980_v3 }
 0xbb1   :  { %1783 = vmatpush3.bf16.msra.mxu0 %v2083_v12 }
 0xbb2   :  { %1784 = vmatprep.subr.bf16.mxu0 %v1980_v3 }
 0xbb5   :  { %1786 = vmatpush3.bf16.msra.mxu0 %v2095_v15 }
 0xbb6   :  { %1799 = vmatprep.subr.bf16.mxu0 %v1980_v3 }
 0xc7b   :  { %v629_v53 = vpop.f32.mrb[4].mxu0 }
 0xc7c   :  { %v630_v54 = vadd.f32 %v629_v53, %v2124_v20  ;;  %v1618_v55 = vpop.f32.mrb[5].mxu0 }
 0xc7e   :  { %1854 = vtanh.f32 %v630_v54  ;;  %v1417_v57 = vmul.f32 -1.442695, %v630_v54 }
 0xc80   :  { %1856 = vpow2.f32 %v1417_v57 }
 0xc88   :  { %v1855_v56 = vpop.eup %1854 }
 0xc89   :  { %651 = vrot.lane.b32.xlu1 %v1855_v56, %s1983_s17 }
 0xc8a   :  { %v1857_v58 = vpop.eup %1856 }
 0xc8b   :  { %v636_v60 = vadd.f32 1.0, %v1857_v58 }
 0xc8d   :  { %1858 = vrcp.f32 %v636_v60  ;;  %v932_v60 = vld [vmem:[%s931_s27] sm:$0x1] }
 0xc97   :  { %v1859_v61 = vpop.eup %1858 }
 0xc98   :  { %v649_v1 = vmul.f32 %v1859_v61, %v647_v0 }
 0xcfb   :  { %v652_v62 = vpop.permute.xlu1 %651 }
 0xcfc   :  { %v654_v63 = vmul.f32 %v1859_v61, %v652_v62 }
 0xcfe   :  { %656 = vrot.lane.b32.xlu1 %v654_v63, %s1979_s19 }
 0xd70   :  { %v657_v2 = vpop.permute.xlu1 %656 }
 0xd71   :  { %v659_v5 = vadd.f32 %v657_v2, %v649_v1 }
 0xd73   :  { %1860 = vtanh.f32 %v659_v5 }
 0xd7d   :  { %v1861_v6 = vpop.eup %1860 }
 0xd7e   :  { %662 = vrot.lane.b32.xlu0 %v1861_v6, %s1983_s17 }
 0xd82   :  { %667 = vrot.lane.b32.xlu0 %v659_v5, %s1984_s18 }
 0xdf0   :  { %v663_v9 = vpop.permute.xlu0 %662 }
 0xdf1   :  { %v2239_v10 = vmul.f32 %v1859_v61, %v663_v9 }
 0xdf3   :  { %672 = vrot.lane.b32.xlu1 %v2239_v10, %s1983_s17 }
 0xdf4   :  { %v668_v11 = vpop.permute.xlu0 %667 }
 0xdf5   :  { %670 = vst.msk [vmem:[#allocation4] sm:$0x1] %vm43_vm0, %v668_v11 }
 0xdfc   :  { %v1422_v13 = vld [vmem:[#allocation4] ss:$0 sm:$0xff] }
 0xdfd   :  { %771 = vrot.lane.b32.xlu0 %v1422_v13, %s1979_s19 }
 0xe65   :  { %v673_v16 = vpop.permute.xlu1 %672 }
 0xe66   :  { %675 = vst.msk [vmem:[#allocation2] sm:$0x1] %vm40_vm2, %v673_v16 }
 0xe67   :  { %683 = vst.msk [vmem:[#allocation2] sm:$0x1] %vm43_vm0, %v682_v14 }
 0xe6e   :  { %v684_v17 = vld [vmem:[#allocation2] sm:$0x1] }
 0xe6f   :  { %1636 = vmatmul.mubr.msk.f32.vlgmr.msra.gmra.mrb[4].mxu1 %vm59_vm3, %v684_v17 }
 0xe70   :  { %1789 = vmatpush3.bf16.msra.mxu1 %v2053_v4  ;;  %1673 = vmatprep.mubr.msk.f32.mxu1 %vm1981_vm1, %v1982_v8 }
 0xe71   :  { %1790 = vmatprep.subr.bf16.mxu1 %v1980_v3 }
 0xe74   :  { %1792 = vmatpush3.bf16.msra.mxu1 %v2063_v7 }
 0xe75   :  { %1793 = vmatprep.subr.bf16.mxu1 %v1980_v3 }
 0xe78   :  { %1795 = vmatpush3.bf16.msra.mxu1 %v2083_v12 }
 0xe79   :  { %1796 = vmatprep.subr.bf16.mxu1 %v1980_v3 }
 0xe7c   :  { %1798 = vmatpush3.bf16.msra.mxu1 %v2095_v15  ;;  %v772_v15 = vpop.permute.xlu0 %771 }
 0xe7d   :  { %1805 = vmatprep.subr.bf16.mxu1 %v1980_v3 }
 0xf42   :  { %v754_v18 = vpop.f32.mrb[4].mxu1 }
 0xf43   :  { %v755_v4 = vadd.f32 %v754_v18, %v2124_v20  ;;  %v1637_v19 = vpop.f32.mrb[5].mxu1 }
 0xf45   :  { %1862 = vtanh.f32 %v755_v4  ;;  %v1421_v22 = vmul.f32 -1.442695, %v755_v4 }
 0xf47   :  { %1864 = vpow2.f32 %v1421_v22  ;;  %v1057_v22 = vld [vmem:[%s2431_s4 + $0x8] sm:$0xff] }
 0xf4f   :  { %v1863_v21 = vpop.eup %1862 }
 0xf50   :  { %776 = vrot.lane.b32.xlu1 %v1863_v21, %s1983_s17  ;;  %v1056_v21 = vld [vmem:[%s2431_s4] sm:$0xff] }
 0xf51   :  { %v1865_v7 = vpop.eup %1864 }
 0xf52   :  { %v761_v23 = vadd.f32 1.0, %v1865_v7  ;;  %v1140_v7 = vld [vmem:[%s2430_s3] sm:$0xff] }
 0xf54   :  { %1866 = vrcp.f32 %v761_v23  ;;  %v1800_v23 = vpack.c.bf16 %v1057_v22, %v1056_v21 }
 0xf5e   :  { %v1867_v12 = vpop.eup %1866 }
 0xf5f   :  { %v774_v27 = vmul.f32 %v1867_v12, %v772_v15 }
 0xfc2   :  { %v777_v25 = vpop.permute.xlu1 %776 }
 0xfc3   :  { %v779_v26 = vmul.f32 %v1867_v12, %v777_v25  ;;  %v1059_v25 = vld [vmem:[%s2431_s4 + $0x18] sm:$0xff] }
 0xfc5   :  { %781 = vrot.lane.b32.xlu1 %v779_v26, %s1979_s19  ;;  %v1142_v26 = vld [vmem:[%s2430_s3 + $0x10] sm:$0xff] }
0x1037   :  { %v782_v28 = vpop.permute.xlu1 %781 }
0x1038   :  { %v784_v29 = vadd.f32 %v782_v28, %v774_v27  ;;  %v1143_v27 = vld [vmem:[%s2430_s3 + $0x18] sm:$0xff] }
0x1039   :  { %v1809_v28 = vpack.c.bf16 %v1143_v27, %v1142_v26 }
0x103a   :  { %1868 = vtanh.f32 %v784_v29 }
0x1044   :  { %v1869_v30 = vpop.eup %1868 }
0x1045   :  { %787 = vrot.lane.b32.xlu0 %v1869_v30, %s1983_s17 }
0x1049   :  { %792 = vrot.lane.b32.xlu0 %v784_v29, %s1984_s18 }
0x10b7   :  { %v788_v31 = vpop.permute.xlu0 %787 }
0x10b8   :  { %v2266_v32 = vmul.f32 %v1867_v12, %v788_v31  ;;  %v1058_v12 = vld [vmem:[%s2431_s4 + $0x10] sm:$0xff] }
0x10b9   :  { %v1803_v15 = vpack.c.bf16 %v1059_v25, %v1058_v12 }
0x10ba   :  { %797 = vrot.lane.b32.xlu1 %v2266_v32, %s1983_s17 }
0x10bb   :  { %v793_v33 = vpop.permute.xlu0 %792 }
0x10bc   :  { %795 = vst.msk [vmem:[#allocation4] sm:$0x1] %vm43_vm0, %v793_v33 }
0x10c3   :  { %v1426_v34 = vld [vmem:[#allocation4] ss:$0 sm:$0xff] }
0x10c4   :  { %896 = vrot.lane.b32.xlu0 %v1426_v34, %s1979_s19 }
0x112c   :  { %v798_v36 = vpop.permute.xlu1 %797 }
0x112d   :  { %800 = vst.msk [vmem:[#allocation2] sm:$0x1] %vm40_vm2, %v798_v36 }
0x112e   :  { %808 = vst.msk [vmem:[#allocation2] sm:$0x1] %vm43_vm0, %v807_v35  ;;  %v1431_v35 = vld [vmem:[%s2433_s6 + $0x4] ss:$0 sm:$0xff] }
0x1135   :  { %v809_v38 = vld [vmem:[#allocation2] sm:$0x1] }
0x1136   :  { %1655 = vmatmul.mubr.msk.f32.vlgmr.msra.gmra.mrb[6].mxu0 %vm59_vm3, %v809_v38  ;;  %v897_v50 = vpop.permute.xlu0 %896 }
0x1137   :  { %1684 = vmatprep.mubr.msk.f32.mxu0 %vm1981_vm1, %v1982_v8  ;;  %1801 = vmatpush3.bf16.msra.mxu0 %v1800_v23 }
0x1138   :  { %1802 = vmatprep.subr.bf16.mxu0 %v1980_v3 }
0x113b   :  { %1804 = vmatpush3.bf16.msra.mxu0 %v1803_v15 }
0x113c   :  { %1698 = vmatprep.subr.mxu0 %v1982_v8 }
0x1209   :  { %v879_v39 = vpop.f32.mrb[6].mxu0 }
0x120a   :  { %v880_v40 = vadd.f32 %v879_v39, %v2124_v20  ;;  %v1656_v41 = vpop.f32.mrb[7].mxu0 }
0x120c   :  { %1870 = vtanh.f32 %v880_v40  ;;  %v1425_v43 = vmul.f32 -1.442695, %v880_v40 }
0x120e   :  { %1872 = vpow2.f32 %v1425_v43 }
0x1216   :  { %v1871_v42 = vpop.eup %1870 }
0x1217   :  { %901 = vrot.lane.b32.xlu1 %v1871_v42, %s1983_s17 }
0x1218   :  { %v1873_v44 = vpop.eup %1872 }
0x1219   :  { %v886_v45 = vadd.f32 1.0, %v1873_v44 }
0x121b   :  { %1874 = vrcp.f32 %v886_v45 }
0x1225   :  { %v1875_v46 = vpop.eup %1874 }
0x1226   :  { %v899_v51 = vmul.f32 %v1875_v46, %v897_v50 }
0x1289   :  { %v902_v48 = vpop.permute.xlu1 %901 }
0x128a   :  { %v904_v49 = vmul.f32 %v1875_v46, %v902_v48 }
0x128c   :  { %906 = vrot.lane.b32.xlu1 %v904_v49, %s1979_s19 }
0x12fe   :  { %v907_v52 = vpop.permute.xlu1 %906 }
0x12ff   :  { %v909_v53 = vadd.f32 %v907_v52, %v899_v51  ;;  %v1226_v51 = vld [vmem:[%s2432_s5] sm:$0xff] }
0x1301   :  { %1876 = vtanh.f32 %v909_v53 }
0x130b   :  { %v1877_v54 = vpop.eup %1876 }
0x130c   :  { %912 = vrot.lane.b32.xlu0 %v1877_v54, %s1983_s17 }
0x1310   :  { %917 = vrot.lane.b32.xlu0 %v909_v53, %s1984_s18 }
0x137e   :  { %v913_v55 = vpop.permute.xlu0 %912 }
0x137f   :  { %v915_v56 = vmul.f32 %v1875_v46, %v913_v55 }
0x1381   :  { %922 = vrot.lane.b32.xlu1 %v915_v56, %s1983_s17 }
0x1382   :  { %v918_v57 = vpop.permute.xlu0 %917 }
0x1383   :  { %920 = vst.msk [vmem:[#allocation4] sm:$0x1] %vm43_vm0, %v918_v57 }
0x138a   :  { %v1430_v58 = vld [vmem:[#allocation4] ss:$0 sm:$0xff] }
0x138b   :  { %1021 = vrot.lane.b32.xlu0 %v1430_v58, %s1979_s19  ;;  %v1436_v58 = vld [vmem:[%s2433_s6 + $0x2] ss:$0 sm:$0xff] }
0x13f3   :  { %v923_v61 = vpop.permute.xlu1 %922 }
0x13f4   :  { %925 = vst.msk [vmem:[#allocation2] sm:$0x1] %vm40_vm2, %v923_v61 }
0x13f5   :  { %933 = vst.msk [vmem:[#allocation2] sm:$0x1] %vm43_vm0, %v932_v60 }
0x13fc   :  { %v934_v62 = vld [vmem:[#allocation2] sm:$0x1] }
0x13fd   :  { %1674 = vmatmul.mubr.msk.f32.vlgmr.msra.gmra.mrb[6].mxu1 %vm59_vm3, %v934_v62 }
0x13fe   :  { %1695 = vmatprep.mubr.msk.f32.mxu1 %vm1981_vm1, %v1982_v8 }
0x14d0   :  { %v1004_v63 = vpop.f32.mrb[6].mxu1 }
0x14d1   :  { %v1005_v0 = vadd.f32 %v1004_v63, %v2124_v20  ;;  %v1675_v1 = vpop.f32.mrb[7].mxu1  ;;  %v1022_v20 = vpop.permute.xlu0 %1021 }
0x14d3   :  { %1878 = vtanh.f32 %v1005_v0  ;;  %v1429_v5 = vmul.f32 -1.442695, %v1005_v0  ;;  %v1437_v0 = vld [vmem:[%s2433_s6 + $0x3] ss:$0 sm:$0xff] }
0x14d5   :  { %1880 = vpow2.f32 %v1429_v5 }
0x14dd   :  { %v1879_v2 = vpop.eup %1878 }
0x14de   :  { %1026 = vrot.lane.b32.xlu1 %v1879_v2, %s1983_s17 }
0x14df   :  { %v1881_v6 = vpop.eup %1880 }
0x14e0   :  { %v1011_v9 = vadd.f32 1.0, %v1881_v6 }
0x14e2   :  { %1882 = vrcp.f32 %v1011_v9 }
0x14ec   :  { %v1883_v11 = vpop.eup %1882 }
0x14ed   :  { %v1024_v16 = vmul.f32 %v1883_v11, %v1022_v20 }
0x1550   :  { %v1027_v13 = vpop.permute.xlu1 %1026 }
0x1551   :  { %v1029_v14 = vmul.f32 %v1883_v11, %v1027_v13 }
0x1553   :  { %1031 = vrot.lane.b32.xlu1 %v1029_v14, %s1979_s19 }
0x1557   :  { %176 = vrot.lane.b32.xlu1 %v2131_v37, %s1979_s19 }
0x155b   :  { %426 = vrot.lane.b32.xlu1 %v2185_v24, %s1979_s19 }
0x155f   :  { %676 = vrot.lane.b32.xlu1 %v2239_v10, %s1979_s19 }
0x1563   :  { %926 = vrot.lane.b32.xlu1 %v915_v56, %s1979_s19 }
0x15c5   :  { %v1032_v17 = vpop.permute.xlu1 %1031 }
0x15c6   :  { %v2306_v18 = vadd.f32 %v1032_v17, %v1024_v16 }
0x15c8   :  { %1884 = vtanh.f32 %v2306_v18 }
0x15c9   :  { %v177_v4 = vpop.permute.xlu1 %176 }
0x15ca   :  { %179 = vst.msk [vmem:[#allocation3] sm:$0x1] %vm43_vm0, %v177_v4 }
0x15cd   :  { %v427_v19 = vpop.permute.xlu1 %426 }
0x15ce   :  { %429 = vst.msk [vmem:[#allocation3 + $0x2] sm:$0x1] %vm43_vm0, %v427_v19 }
0x15d1   :  { %v677_v37 = vpop.permute.xlu1 %676 }
0x15d2   :  { %v1885_v24 = vpop.eup %1884  ;;  %679 = vst.msk [vmem:[#allocation3 + $0x4] sm:$0x1] %vm43_vm0, %v677_v37 }
0x15d3   :  { %1037 = vrot.lane.b32.xlu0 %v1885_v24, %s1983_s17 }
0x15d5   :  { %v927_v10 = vpop.permute.xlu1 %926 }
0x15d6   :  { %929 = vst.msk [vmem:[#allocation3 + $0x6] sm:$0x1] %vm43_vm0, %v927_v10 }
0x15d7   :  { %301 = vrot.lane.b32.xlu0 %v2158_v59, %s1979_s19  ;;  %v1141_v59 = vld [vmem:[%s2430_s3 + $0x8] sm:$0xff] }
0x15db   :  { %551 = vrot.lane.b32.xlu0 %v2212_v47, %s1979_s19  ;;  %v1806_v47 = vpack.c.bf16 %v1141_v59, %v1140_v7 }
0x15dd   :  { %1807 = vmatpush3.bf16.msra.mxu1 %v1806_v47 }
0x15de   :  { %1808 = vmatprep.subr.bf16.mxu1 %v1980_v3 }
0x15df   :  { %801 = vrot.lane.b32.xlu0 %v2266_v32, %s1979_s19 }
0x15e1   :  { %1810 = vmatpush3.bf16.msra.mxu1 %v1809_v28 }
0x1645   :  { %v1038_v29 = vpop.permute.xlu0 %1037 }
0x1646   :  { %v1040_v30 = vmul.f32 %v1883_v11, %v1038_v29 }
0x1648   :  { %1051 = vrot.lane.b32.xlu0 %v1040_v30, %s1979_s19 }
0x1649   :  { %v302_v31 = vpop.permute.xlu0 %301 }
0x164a   :  { %304 = vst.msk [vmem:[#allocation3 + $0x1] sm:$0x1] %vm43_vm0, %v302_v31 }
0x164d   :  { %v552_v32 = vpop.permute.xlu0 %551 }
0x164e   :  { %554 = vst.msk [vmem:[#allocation3 + $0x3] sm:$0x1] %vm43_vm0, %v552_v32 }
0x1651   :  { %v802_v33 = vpop.permute.xlu0 %801 }
0x1652   :  { %804 = vst.msk [vmem:[#allocation3 + $0x5] sm:$0x1] %vm43_vm0, %v802_v33 }
0x16ba   :  { %v1052_v34 = vpop.permute.xlu0 %1051 }
0x16bb   :  { %1054 = vst.msk [vmem:[#allocation3 + $0x7] sm:$0x1] %vm43_vm0, %v1052_v34 }
0x16c2   :  { %v2352_v3 = vld [vmem:[#allocation3] sm:$0xff] }
0x16c3   :  { %1685 = vmatmul.mubr.msk.f32.vlgmr.msra.gmra.mrb[8].mxu0 %vm1065_vm4, %v2352_v3  ;;  %1696 = vmatmul.mubr.msk.f32.vlgmr.msra.gmra.mrb[8].mxu1 %vm1065_vm4, %v2352_v3 }
0x16c4   :  { %1700 = vmatprep.mubr.msk.f32.mxu0 %vm1981_vm1, %v1982_v8  ;;  %v1435_v8 = vld [vmem:[%s2433_s6 + $0x1] ss:$0 sm:$0xff]  ;;  %1699 = vmatpush3.msra.mxu0 %v1226_v51 }
0x16c5   :  { %v1305_v49 = vmul.f32 %v1435_v8, %v2352_v3 }
0x16c7   :  { %v1306_v50 = vsel %vm1065_vm4, %v1305_v49, 0.0 }
0x1796   :  { %v1135_v36 = vpop.f32.mrb[8].mxu0  ;;  %v1210_v38 = vpop.f32.mrb[8].mxu1 }
0x1797   :  { %v1136_v39 = vadd.f32 %v1431_v35, %v1135_v36  ;;  %v1686_v40 = vpop.f32.mrb[9].mxu0  ;;  %v1697_v41 = vpop.f32.mrb[9].mxu1  ;;  %v1215_v42 = vsel %vm1214_vm5, %v1210_v38, -inf }
0x1798   :  { %1216 = vmax.xlane.f32.xlu1 %v1215_v42 }
0x1799   :  { %1139 = vst [vmem:[#allocation7] sm:$0xff] %v1136_v39 }
0x1825   :  { %v1217_v43 = vpop.xlane.xlu1 %1216 }
0x1826   :  { %v1218_v44 = vsub.f32 %v1210_v38, %v1217_v43 }
0x1828   :  { %v1219_v45 = vmul.f32 1.442695, %v1218_v44 }
0x182a   :  { %1886 = vpow2.f32 %v1219_v45 }
0x1834   :  { %v1887_v46 = vpop.eup %1886 }
0x1835   :  { %v1221_v48 = vsel %vm1214_vm5, %v1887_v46, 0.0 }
0x1836   :  { %1222 = vadd.xlane.f32.xlu0 %v1221_v48 }
0x183a   :  { %1307 = vadd.xlane.f32.xlu0 %v1306_v50 }
0x1850   :  { %1042 = vrot.lane.b32.xlu0 %v2306_v18, %s1984_s18 }
0x1854   :  { %1047 = vrot.lane.b32.xlu0 %v1040_v30, %s1983_s17 }
0x18c3   :  { %v1223_v52 = vpop.xlane.xlu0 %1222 }
0x18c4   :  { %1888 = vrcp.f32 %v1223_v52 }
0x18c7   :  { %v1308_v53 = vpop.xlane.xlu0 %1307 }
0x18cb   :  { %v1043_v54 = vpop.permute.xlu0 %1042 }
0x18cc   :  { %1045 = vst.msk [vmem:[#allocation4] sm:$0x1] %vm43_vm0, %v1043_v54 }
0x18ce   :  { %v1889_v55 = vpop.eup %1888 }
0x18cf   :  { %v1225_v56 = vmul.f32 %v1889_v55, %v1887_v46  ;;  %v1048_v57 = vpop.permute.xlu0 %1047 }
0x18d0   :  { %1050 = vst.msk [vmem:[#allocation2] sm:$0x1] %vm40_vm2, %v1048_v57 }
0x18d1   :  { %1701 = vmatmul.mubr.msk.f32.vlgmr.msra.gmra.mrb[10].mxu0 %vm1214_vm5, %v1225_v56 }
0x19a4   :  { %v1296_v60 = vpop.f32.mrb[10].mxu0 }
0x19a5   :  { %v1314_v61 = vmul.f32 %v1436_v58, %v1296_v60  ;;  %v1702_v62 = vpop.f32.mrb[11].mxu0 }
0x19a7   :  { %v1315_v63 = vsel %vm1065_vm4, %v1314_v61, 0.0 }
0x19a8   :  { %1316 = vadd.xlane.f32.xlu1 %v1315_v63 }
0x1a35   :  { %v1317_v1 = vpop.xlane.xlu1 %1316 }
0x1a36   :  { %v1318_v2 = vadd.f32 %v1317_v1, %v1308_v53 }
0x1a38   :  { %v1324_v5 = vadd.f32 %v1437_v0, %v1318_v2 }
0x1a3a   :  { %v1438_v6 = vmul.f32 -1.442695, %v1324_v5 }
0x1a3c   :  { %1890 = vpow2.f32 %v1438_v6 }
0x1a46   :  { %v1891_v9 = vpop.eup %1890 }
0x1a47   :  { %v1328_v11 = vadd.f32 1.0, %v1891_v9 }
0x1a49   :  { %1892 = vrcp.f32 %v1328_v11 }
0x1a4a   :  { %1917 = shalt.err (!%p1914_p9)
}
0x1a4b   :  { %s1918_s10 = scalar_lea.hbm %s2434_s7, 128 }
0x1a4c   :  { %p1919_p10 = scmp.ne.s32.totalorder %s2434_s7, %s1918_s10  ;;  %p1922_p11 = scmp.lt.u32.totalorder %s1918_s10, %s2434_s7 }
0x1a4e   :  { %p1924_p12 = pnand %p1922_p11, %p1919_p10 }
0x1a50   :  { %1927 = shalt.err (!%p1924_p12)
}
0x1a51   :  { %1360 = dma.vmem_to_hbm [thread:$0]  %s1358_s28, 128, %s2434_s7, [#allocation8]   ;;  %v1439_v14 = vld [vmem:[#allocation4] ss:$0 sm:$0xff]  ;;  %vm1336_vm6 = vcmask 72704  }
0x1a52   :  { %s1986_s16 = smov 8   ;;  %s1987_s0 = smov [#allocation9]  }
0x1a53   :  { %v1893_v13 = vpop.eup %1892  ;;  %s1367_s20 = sshll.u32 %s1987_s0, 4  ;;  %s1988_s21 = smov [#allocation11]   ;;  %s1368_s20 = int_to_ptr.vmem [resolvable:$true] %s1367_s20 }
0x1a54   :  { %1332 = vrot.lane.b32.xlu1 %v1893_v13, %s1986_s16  ;;  %s1377_s22 = sshll.u32 %s1988_s21, 4  ;;  %s1928_s3 = scalar_lea.vmem %s1368_s20, 128  ;;  %s1378_s22 = int_to_ptr.vmem [resolvable:$true] %s1377_s22 }
0x1a55   :  { %p1929_p13 = scmp.ne.s32.totalorder %s1368_s20, %s1928_s3  ;;  %p1933_p0 = scmp.lt.s32.totalorder %s1368_s20, %s1368_s20 }
0x1a56   :  { %p1934_p1 = scmp.lt.s32.totalorder %s1928_s3, %s1928_s3 }
0x1a58   :  { %1345 = vrot.lane.b32.xlu1 %v1439_v14, %s1979_s19  ;;  %p1935_p2 = por %p1934_p1, %p1933_p0 }
0x1a5a   :  { %p1936_p3 = pnand %p1935_p2, %p1929_p13 }
0x1ac6   :  { %v1333_v20 = vpop.permute.xlu1 %1332 }
0x1ac7   :  { %v1335_v16 = vsel %vm1214_vm5, %v1225_v56, %v1333_v20 }
0x1ac8   :  { %v1337_v17 = vsel %vm1336_vm6, %v1335_v16, 0.0 }
0x1ac9   :  { %1338 = vst [vmem:[#allocation9] sm:$0xff] %v1337_v17 }
0x1aca   :  { %v1346_v18 = vpop.permute.xlu1 %1345 }
0x1acb   :  { %1939 = shalt.err (!%p1936_p3)
}
0x1acc   :  { %s1940_s4 = scalar_lea.hbm %s2435_s8, 128 }
0x1acd   :  { %p1941_p4 = scmp.ne.s32.totalorder %s2435_s8, %s1940_s4  ;;  %p1944_p5 = scmp.lt.u32.totalorder %s1940_s4, %s2435_s8 }
0x1acf   :  { %p1946_p6 = pnand %p1944_p5, %p1941_p4 }
0x1ad1   :  { %1949 = shalt.err (!%p1946_p6)
}
0x1ad2   :  { %1370 = dma.vmem_to_hbm [thread:$0]  %s1368_s20, 128, %s2435_s8, [#allocation10]   ;;  %v1348_v4 = vsel %vm1065_vm4, %v2352_v3, %v1346_v18 }
0x1ad3   :  { %v1349_v19 = vsel %vm59_vm3, %v1348_v4, 0.0  ;;  %s1950_s17 = scalar_lea.vmem %s1378_s22, 16  ;;  %s1954_s18 = scalar_lea.vmem %s1378_s22, 32 }
0x1ad4   :  { %1350 = vst [vmem:[#allocation11 - $0x7] sm:$0x80] %v1349_v19  ;;  %p1951_p7 = scmp.ne.s32.totalorder %s1378_s22, %s1950_s17  ;;  %p1955_p8 = scmp.lt.s32.totalorder %s1378_s22, %s1378_s22 }
0x1ad5   :  { %p1956_p9 = scmp.lt.s32.totalorder %s1954_s18, %s1950_s17 }
0x1ad7   :  { %p1957_p10 = por %p1956_p9, %p1955_p8 }
0x1ad9   :  { %p1958_p11 = pnand %p1957_p10, %p1951_p7 }
0x1adb   :  { %1961 = shalt.err (!%p1958_p11)
}
0x1adc   :  { %s1962_s29 = scalar_lea.hbm %s2436_s9, 16 }
0x1add   :  { %p1963_p12 = scmp.ne.s32.totalorder %s2436_s9, %s1962_s29  ;;  %p1966_p13 = scmp.lt.u32.totalorder %s1962_s29, %s2436_s9 }
0x1adf   :  { %p1968_p0 = pnand %p1966_p13, %p1963_p12 }
0x1ae1   :  { %1971 = shalt.err (!%p1968_p0)
}
0x1ae2   :  { %1380 = dma.vmem_to_hbm [thread:$0]  %s1378_s22, 16, %s2436_s9, [#allocation10]  }
0x1ae3   :  { %1974 = dma.done.wait [#allocation8], 128  }
0x1ae4   :  { %1975 = vsyncadd [#allocation8], 4294967168 }
0x1ae5   :  { %1976 = dma.done.wait [#allocation10], 144  }
0x1ae6   :  { %1977 = vsyncadd [#allocation10], 4294967152 }
0x1ae7   :  { %1390 = vsyncpa [#allocation8], 1 }
0x1ae8   :  { %1391 = vsyncpa [#allocation10], 1 }

</bundles_post_ra>
